<compile_context>
chip_gen: v7x
topology: tpu7x:2x2x1
jax: 0.10.0
libtpu: 0.0.40
codegen_flags: <defaults>
</compile_context>

<pallas_src>
import functools

import jax
import jax.numpy as jnp
from jax.experimental import pallas as pl
from jax.experimental.pallas import tpu as pltpu


def relu_matmul_wx_kernel(w_ref, x_ref, o_ref):
    """o = w @ relu(x); bf16 MXU inputs, f32 accumulation."""
    x = jnp.maximum(x_ref[...], jnp.zeros((), x_ref.dtype)).astype(jnp.bfloat16)
    w = w_ref[...].astype(jnp.bfloat16)
    o_ref[...] = jnp.dot(
        w, x, preferred_element_type=jnp.float32
    ).astype(o_ref.dtype)


def _relu_conv_call(x_ncl, w_mat, *, tm):
    """x_ncl: (N, C_in, L), w_mat: (C_out, C_in) -> (N, C_out, L)."""
    n, cin, l = x_ncl.shape
    cout = w_mat.shape[0]
    dtype_bytes = x_ncl.dtype.itemsize

    cost = pl.CostEstimate(
        flops=2 * n * cout * cin * l,
        bytes_accessed=dtype_bytes * (cout * cin + n * cin * l + n * cout * l),
        transcendentals=0,
    )

    return pl.pallas_call(
        relu_matmul_wx_kernel,
        out_shape=jax.ShapeDtypeStruct((n, cout, l), x_ncl.dtype),
        grid_spec=pltpu.PrefetchScalarGridSpec(
            num_scalar_prefetch=0,
            grid=(n, cout // tm),
            in_specs=[
                # Weight tile: (tm, C_in), full K in one block.
                pl.BlockSpec((tm, cin), lambda b, i: (i, 0)),
                # Activations: whole (C_in, L) slab for batch b (L = full
                # extent, so no 128-lane divisibility requirement).
                pl.BlockSpec((None, cin, l), lambda b, i: (b, 0, 0)),
            ],
            # (tm, L) output tile; masked stores on the last partial lane
            # group are cheaper than wrapper-side pad + slice round trips.
            out_specs=pl.BlockSpec((None, tm, l), lambda b, i: (b, i, 0)),
        ),
        compiler_params=pltpu.CompilerParams(
            dimension_semantics=("parallel", "parallel")
        ),
        cost_estimate=cost,
    )(w_mat, x_ncl)


@functools.partial(jax.jit, static_argnames=("tm",))
def relu_conv2d_1x1(x_nchw, weight_oihw, *, tm=256):
    """Equivalent of M.forward: ReLU followed by a 1x1 conv (no bias).

    x_nchw:      (N, C_in, H, W)  float32
    weight_oihw: (C_out, C_in, 1, 1)  float32 (PyTorch conv weight layout)
    returns:     (N, C_out, H, W)  float32
    """
    n, cin, h, w = x_nchw.shape
    cout = weight_oihw.shape[0]
    l = h * w

    # Pick a C_out tile that divides C_out (multiple of 256 preferred for the
    # 256x256 MXU; 256 -> 4 grid steps hides the W DMA prologue and lets v7x
    # split tiles across both TensorCores).
    while cout % tm != 0:
        tm //= 2

    # Free reshapes: NCHW -> (N, C_in, H*W); (C_out, C_in, 1, 1) -> (C_out, C_in).
    x = x_nchw.reshape(n, cin, l)
    w_mat = weight_oihw.reshape(cout, cin)

    out = _relu_conv_call(x, w_mat, tm=tm)

    # Free reshape back: (N, C_out, H*W) -> NCHW.
    return out.reshape(n, cout, h, w)


if __name__ == "__main__":
    key = jax.random.PRNGKey(0)
    kx, kw = jax.random.split(key)

    # Shapes implied by the module: input (1, 1024, 14, 14), weight (1024, 1024, 1, 1).
    N, C, H, W = 1, 1024, 14, 14
    x = jax.random.normal(kx, (N, C, H, W), dtype=jnp.float32)

    # Deterministic synthetic weight (Kaiming-uniform-ish scale, 1x1 kernel).
    fan_in = C
    bound = 1.0 / (fan_in ** 0.5)
    weight = jax.random.uniform(
        kw, (C, C, 1, 1), dtype=jnp.float32, minval=-bound, maxval=bound
    )

    y = relu_conv2d_1x1(x, weight)
    y = jax.block_until_ready(y)

    assert y.shape == (N, C, H, W), y.shape
    assert bool(jnp.all(jnp.isfinite(y)))

    # Correctness check against a plain-JAX f32 reference.  Tolerance is
    # loosened vs the pure-f32 version because the kernel feeds the MXU in
    # bf16 (f32 accumulation) over a K=1024 reduction.
    ref = jnp.einsum(
        "nchw,oc->nohw", jnp.maximum(x, 0.0), weight.reshape(C, C)
    )
    assert bool(jnp.allclose(y, ref, atol=2e-2, rtol=2e-2))

    print("KERNEL_OK")
</pallas_src>

<mosaic_0001>
module attributes {stable_mosaic.version = 11 : i64} {
  func.func @relu_matmul_wx_kernel(%arg0: i32, %arg1: i32, %arg2: memref<256x1024xf32, #tpu.memory_space<vmem>>, %arg3: memref<1x1024x196xf32, #tpu.memory_space<vmem>>, %arg4: memref<1x256x196xf32, #tpu.memory_space<vmem>>) attributes {dimension_semantics = [#tpu.dimension_semantics<parallel>, #tpu.dimension_semantics<parallel>], iteration_bounds = array<i64: 1, 4>, scalar_prefetch = 0 : i64, scratch_operands = 0 : i64, tpu.core_type = #tpu.core_type<tc>, window_params = [{transform_indices = @transform_0, window_bounds = array<i64: 256, 1024>}, {transform_indices = @transform_1, window_bounds = array<i64: 1, 1024, 196>}, {transform_indices = @transform_2, window_bounds = array<i64: 1, 256, 196>}]} {
    %c0 = arith.constant 0 : index
    %c0_0 = arith.constant 0 : index
    %c0_1 = arith.constant 0 : index
    %0 = vector.load %arg3[%c0, %c0_0, %c0_1] : memref<1x1024x196xf32, #tpu.memory_space<vmem>>, vector<1x1024x196xf32>
    %1 = vector.shape_cast %0 : vector<1x1024x196xf32> to vector<1024x196xf32>
    %cst = arith.constant 0.000000e+00 : f32
    %2 = vector.broadcast %cst : f32 to vector<1024x196xf32>
    %3 = arith.maximumf %1, %2 : vector<1024x196xf32>
    %4 = arith.truncf %3 : vector<1024x196xf32> to vector<1024x196xbf16>
    %c0_2 = arith.constant 0 : index
    %c0_3 = arith.constant 0 : index
    %5 = vector.load %arg2[%c0_2, %c0_3] : memref<256x1024xf32, #tpu.memory_space<vmem>>, vector<256x1024xf32>
    %6 = arith.truncf %5 : vector<256x1024xf32> to vector<256x1024xbf16>
    %cst_4 = arith.constant dense<0.000000e+00> : vector<256x196xf32>
    %7 = tpu.matmul %6, %4, %cst_4 {dimension_numbers = #tpu.dot_dimension_numbers<[1], [0], [0], [1], [0, 0, 1, 1], [], []>} : vector<256x1024xbf16>, vector<1024x196xbf16>, vector<256x196xf32> -> vector<256x196xf32>
    %c0_5 = arith.constant 0 : index
    %c0_6 = arith.constant 0 : index
    %c0_7 = arith.constant 0 : index
    %8 = vector.load %arg4[%c0_5, %c0_6, %c0_7] : memref<1x256x196xf32, #tpu.memory_space<vmem>>, vector<1x256x196xf32>
    %9 = vector.shape_cast %8 : vector<1x256x196xf32> to vector<256x196xf32>
    %10 = vector.shape_cast %7 : vector<256x196xf32> to vector<1x256x196xf32>
    tpu.vector_store %arg4[%c0_5, %c0_6, %c0_7], %10 {strides = array<i32>} : memref<1x256x196xf32, #tpu.memory_space<vmem>>, vector<1x256x196xf32>,
    return
  }
  func.func @transform_0(%arg0: i32, %arg1: i32) -> (i32, i32) {
    %c0_i32 = arith.constant 0 : i32
    %c0_i32_0 = arith.constant 0 : i32
    return %arg1, %c0_i32 : i32, i32
  }
  func.func @transform_1(%arg0: i32, %arg1: i32) -> (i32, i32, i32) {
    %c0_i32 = arith.constant 0 : i32
    %c0_i32_0 = arith.constant 0 : i32
    %c0_i32_1 = arith.constant 0 : i32
    return %arg0, %c0_i32, %c0_i32_0 : i32, i32, i32
  }
  func.func @transform_2(%arg0: i32, %arg1: i32) -> (i32, i32, i32) {
    %c0_i32 = arith.constant 0 : i32
    %c0_i32_0 = arith.constant 0 : i32
    return %arg0, %arg1, %c0_i32 : i32, i32, i32
  }
}

</mosaic_0001>

<bundles_post_ra>
// kernel: relu_conv2d_1x1.1
= control target key start
LH: loop header
LB: loop body
LE: loop exit
PB: predicated region body
PF: predicated region fallthrough
CT: control target
= control target key end

     0   :  { %s2428_s9 = smov 0   ;;  %s2430_s10 = smov 0   ;;  %s3701_s0 = inlined_call_operand.vmem [shape: f32[1024,1024], index: 0, kind: input, shape index: {}]   ;;  %s3702_s1 = inlined_call_operand.vmem [shape: f32[1,1024,196], index: 1, kind: input, shape index: {}]   ;;  %s3703_s2 = inlined_call_operand.vmem [shape: f32[1,1024,196], index: 2, kind: output, shape index: {}]  }
   0x1   :  { %s2432_s11 = smov 0  }
   0x2 LB: > { %s21_s12 = sadd.s32 1, %s2407_s10  ;;  %p2162_p0 = scmp.ge.s32.totalorder %s2411_s11, 1  ;;  %s2411_s11 = sphi %s2432_s11, %s12_s11   ;;  %s2407_s10 = sphi %s2430_s10, %s3706_s10   ;;  %s2403_s9 = sphi %s2428_s9, %s3705_s9  }
   0x3   : > { %p22_p1 = scmp.ge.s32.totalorder %s21_s12, 4  ;;  %p138_p2 = scmp.lt.s32.totalorder %s2411_s11, 5 }
   0x5   : > { %s3708_s12 = smov (%p22_p1, %s21_s12), 0  ;;  %p139_p3 = pnand %p2162_p0, %p138_p2 }
   0x6   : > { %v195_v0 = vld [vmem:[%s3702_s1 + $0x8] sm:$0xff] (!%p139_p3)  ;;  %v197_v1 = vld [vmem:[%s3702_s1 + $0x18] sm:$0xff] (!%p139_p3)  ;;  %v194_v7 = vld [vmem:[%s3702_s1] sm:$0xff] (!%p139_p3)  ;;  %s2163_s13 = sshll.u32 (!%p139_p3), %s2403_s9, 5  ;;  %vm1991_vm0 = vcmask (!%p139_p3), 556032  }
   0x7   : > { %142 = sbr.rel (%p139_p3) target bundleno = 542 (0x21e), region = 28  ;;  %v323_v2 = vld [vmem:[%s3702_s1 + $0x408] sm:$0xff] (!%p139_p3)  ;;  %v451_v3 = vmax.f32 (!%p139_p3), %v195_v0, 0.0  ;;  %v453_v4 = vmax.f32 (!%p139_p3), %v197_v1, 0.0  ;;  %v325_v5 = vld [vmem:[%s3702_s1 + $0x418] sm:$0xff] (!%p139_p3)  ;;  %v196_v8 = vld [vmem:[%s3702_s1 + $0x10] sm:$0xff] (!%p139_p3) }
   0x8   : > { %v579_v6 = vmax.f32 (!%p139_p3), %v323_v2, 0.0  ;;  %v581_v9 = vmax.f32 (!%p139_p3), %v325_v5, 0.0  ;;  %v450_v10 = vmax.f32 (!%p139_p3), %v194_v7, 0.0  ;;  %v452_v11 = vmax.f32 (!%p139_p3), %v196_v8, 0.0  ;;  %v322_v12 = vld [vmem:[%s3702_s1 + $0x400] sm:$0xff] (!%p139_p3)  ;;  %v324_v13 = vld [vmem:[%s3702_s1 + $0x410] sm:$0xff] (!%p139_p3) }
   0x9   : > { %v199_v14 = vld [vmem:[%s3702_s1 + $0x28] sm:$0xff] (!%p139_p3)  ;;  %v707_v15 = vpack.c.bf16 (!%p139_p3), %v453_v4, %v451_v3  ;;  %v578_v16 = vmax.f32 (!%p139_p3), %v322_v12, 0.0  ;;  %v580_v17 = vmax.f32 (!%p139_p3), %v324_v13, 0.0  ;;  %v201_v18 = vld [vmem:[%s3702_s1 + $0x38] sm:$0xff] (!%p139_p3)  ;;  %v198_v26 = vld [vmem:[%s3702_s1 + $0x20] sm:$0xff] (!%p139_p3)  ;;  %p2679_p4 = scmp.lt.s32.totalorder (!%p139_p3), %s2163_s13, 127 }
   0xa   : > { %v455_v19 = vmax.f32 (!%p139_p3), %v199_v14, 0.0  ;;  %v327_v20 = vld [vmem:[%s3702_s1 + $0x428] sm:$0xff] (!%p139_p3)  ;;  %v329_v21 = vld [vmem:[%s3702_s1 + $0x438] sm:$0xff] (!%p139_p3)  ;;  %v771_v22 = vpack.c.bf16 (!%p139_p3), %v581_v9, %v579_v6  ;;  %v706_v23 = vpack.c.bf16 (!%p139_p3), %v452_v11, %v450_v10  ;;  %v457_v24 = vmax.f32 (!%p139_p3), %v201_v18, 0.0  ;;  %v200_v27 = vld [vmem:[%s3702_s1 + $0x30] sm:$0xff] (!%p139_p3) }
   0xb   : > { %v583_v25 = vmax.f32 (!%p139_p3), %v327_v20, 0.0  ;;  %v326_v28 = vld [vmem:[%s3702_s1 + $0x420] sm:$0xff] (!%p139_p3)  ;;  %1218 = vmatprep.subr.bf16.mxu1 (!%p139_p3), %v707_v15  ;;  %v770_v29 = vpack.c.bf16 (!%p139_p3), %v580_v17, %v578_v16  ;;  %v585_v30 = vmax.f32 (!%p139_p3), %v329_v21, 0.0  ;;  %v454_v31 = vmax.f32 (!%p139_p3), %v198_v26, 0.0  ;;  %v328_v33 = vld [vmem:[%s3702_s1 + $0x430] sm:$0xff] (!%p139_p3)  ;;  %v203_v34 = vld [vmem:[%s3702_s1 + $0x48] sm:$0xff] (!%p139_p3) }
   0xc   : > { %v456_v32 = vmax.f32 (!%p139_p3), %v200_v27, 0.0  ;;  %v205_v35 = vld [vmem:[%s3702_s1 + $0x58] sm:$0xff] (!%p139_p3)  ;;  %1604 = vmatprep.subr.bf16.mxu0 (!%p139_p3), %v771_v22  ;;  %1219 = vmatpush1.bf16.msra.mxu1 (!%p139_p3), %v706_v23  ;;  %v709_v36 = vpack.c.bf16 (!%p139_p3), %v457_v24, %v455_v19  ;;  %v582_v37 = vmax.f32 (!%p139_p3), %v326_v28, 0.0  ;;  %v584_v38 = vmax.f32 (!%p139_p3), %v328_v33, 0.0  ;;  %v331_v40 = vld [vmem:[%s3702_s1 + $0x448] sm:$0xff] (!%p139_p3)  ;;  %v202_v42 = vld [vmem:[%s3702_s1 + $0x40] sm:$0xff] (!%p139_p3) }
   0xd   : > { %v459_v39 = vmax.f32 (!%p139_p3), %v203_v34, 0.0  ;;  %v333_v41 = vld [vmem:[%s3702_s1 + $0x458] sm:$0xff] (!%p139_p3)  ;;  %1605 = vmatpush1.bf16.msra.mxu0 (!%p139_p3), %v770_v29  ;;  %v773_v43 = vpack.c.bf16 (!%p139_p3), %v585_v30, %v583_v25  ;;  %v461_v45 = vmax.f32 (!%p139_p3), %v205_v35, 0.0  ;;  %v587_v46 = vmax.f32 (!%p139_p3), %v331_v40, 0.0  ;;  %v204_v47 = vld [vmem:[%s3702_s1 + $0x50] sm:$0xff] (!%p139_p3)  ;;  %v330_v48 = vld [vmem:[%s3702_s1 + $0x440] sm:$0xff] (!%p139_p3) }
   0xe   : > { %v708_v44 = vpack.c.bf16 %v456_v32, %v454_v31  ;;  %v332_v49 = vld [vmem:[%s3702_s1 + $0x450] sm:$0xff]  ;;  %1220 = vmatprep.subr.bf16.mxu1 %v709_v36  ;;  %v772_v50 = vpack.c.bf16 %v584_v38, %v582_v37  ;;  %v589_v51 = vmax.f32 %v333_v41, 0.0  ;;  %v458_v52 = vmax.f32 %v202_v42, 0.0  ;;  %v207_v54 = vld [vmem:[%s3702_s1 + $0x68] sm:$0xff]  ;;  %v209_v55 = vld [vmem:[%s3702_s1 + $0x78] sm:$0xff]  ;;  %s3710_s13 = smov (!%p2679_p4, %s2163_s13), 127 }
   0xf   : > { %v460_v53 = vmax.f32 %v204_v47, 0.0  ;;  %v335_v56 = vld [vmem:[%s3702_s1 + $0x468] sm:$0xff]  ;;  %1606 = vmatprep.subr.bf16.mxu0 %v773_v43  ;;  %v711_v57 = vpack.c.bf16 %v461_v45, %v459_v39  ;;  %v586_v58 = vmax.f32 %v330_v48, 0.0  ;;  %v588_v59 = vmax.f32 %v332_v49, 0.0  ;;  %v337_v61 = vld [vmem:[%s3702_s1 + $0x478] sm:$0xff]  ;;  %v206_v62 = vld [vmem:[%s3702_s1 + $0x60] sm:$0xff] }
  0x10   : > { %v463_v60 = vmax.f32 %v207_v54, 0.0  ;;  %v208_v63 = vld [vmem:[%s3702_s1 + $0x70] sm:$0xff]  ;;  %1221 = vmatpush1.bf16.msra.mxu1 %v708_v44  ;;  %v775_v0 = vpack.c.bf16 %v589_v51, %v587_v46  ;;  %v465_v2 = vmax.f32 %v209_v55, 0.0  ;;  %v591_v3 = vmax.f32 %v335_v56, 0.0  ;;  %v334_v4 = vld [vmem:[%s3702_s1 + $0x460] sm:$0xff]  ;;  %v211_v6 = vld [vmem:[%s3702_s1 + $0x88] sm:$0xff] }
  0x11   : > { %v710_v1 = vpack.c.bf16 %v460_v53, %v458_v52  ;;  %v336_v5 = vld [vmem:[%s3702_s1 + $0x470] sm:$0xff]  ;;  %1607 = vmatpush1.bf16.msra.mxu0 %v772_v50  ;;  %1222 = vmatprep.subr.bf16.mxu1 %v711_v57  ;;  %v774_v7 = vpack.c.bf16 %v588_v59, %v586_v58  ;;  %v593_v8 = vmax.f32 %v337_v61, 0.0  ;;  %v462_v9 = vmax.f32 %v206_v62, 0.0  ;;  %v213_v11 = vld [vmem:[%s3702_s1 + $0x98] sm:$0xff]  ;;  %v339_v12 = vld [vmem:[%s3702_s1 + $0x488] sm:$0xff]  ;;  %s2171_s14 = sshll.u32 %s3710_s13, 6 }
  0x12   : > { %v464_v10 = vmax.f32 %v208_v63, 0.0  ;;  %v341_v13 = vld [vmem:[%s3702_s1 + $0x498] sm:$0xff]  ;;  %1608 = vmatprep.subr.bf16.mxu0 %v775_v0  ;;  %v713_v14 = vpack.c.bf16 %v465_v2, %v463_v60  ;;  %v590_v15 = vmax.f32 %v334_v4, 0.0  ;;  %v592_v16 = vmax.f32 %v336_v5, 0.0  ;;  %v210_v18 = vld [vmem:[%s3702_s1 + $0x80] sm:$0xff]  ;;  %v212_v19 = vld [vmem:[%s3702_s1 + $0x90] sm:$0xff]  ;;  %s2777_s6 = scalar_lea.vmem %s3701_s0, %s2171_s14 }
  0x13   : > { %v467_v17 = vmax.f32 %v211_v6, 0.0  ;;  %v338_v20 = vld [vmem:[%s3702_s1 + $0x480] sm:$0xff]  ;;  %v777_v21 = vpack.c.bf16 %v593_v8, %v591_v3  ;;  %v469_v23 = vmax.f32 %v213_v11, 0.0  ;;  %v595_v24 = vmax.f32 %v339_v12, 0.0  ;;  %v340_v25 = vld [vmem:[%s3702_s1 + $0x490] sm:$0xff]  ;;  %v215_v26 = vld [vmem:[%s3702_s1 + $0xa8] sm:$0xff] }
  0x14   : > { %v712_v22 = vpack.c.bf16 %v464_v10, %v462_v9  ;;  %v217_v27 = vld [vmem:[%s3702_s1 + $0xb8] sm:$0xff]  ;;  %1223 = vmatpush1.bf16.msra.mxu1 %v710_v1  ;;  %v776_v28 = vpack.c.bf16 %v592_v16, %v590_v15  ;;  %v597_v29 = vmax.f32 %v341_v13, 0.0  ;;  %v466_v30 = vmax.f32 %v210_v18, 0.0  ;;  %v343_v32 = vld [vmem:[%s3702_s1 + $0x4a8] sm:$0xff]  ;;  %v214_v34 = vld [vmem:[%s3702_s1 + $0xa0] sm:$0xff]  ;;  %s2172_s17 = sshll.u32 %s3710_s13, 4 }
  0x15   : > { %v468_v31 = vmax.f32 %v212_v19, 0.0  ;;  %v345_v33 = vld [vmem:[%s3702_s1 + $0x4b8] sm:$0xff]  ;;  %1609 = vmatpush1.bf16.msra.mxu0 %v774_v7  ;;  %1224 = vmatprep.subr.bf16.mxu1 %v713_v14  ;;  %v715_v35 = vpack.c.bf16 %v469_v23, %v467_v17  ;;  %v594_v36 = vmax.f32 %v338_v20, 0.0  ;;  %v596_v37 = vmax.f32 %v340_v25, 0.0  ;;  %v216_v39 = vld [vmem:[%s3702_s1 + $0xb0] sm:$0xff]  ;;  %v342_v40 = vld [vmem:[%s3702_s1 + $0x4a0] sm:$0xff]  ;;  %s3594_s20 = scalar_lea.vmem %s3703_s2, %s2172_s17 }
  0x16   : > { %v471_v38 = vmax.f32 %v215_v26, 0.0  ;;  %1610 = vmatprep.subr.bf16.mxu0 %v777_v21  ;;  %v779_v41 = vpack.c.bf16 %v597_v29, %v595_v24  ;;  %v473_v42 = vmax.f32 %v217_v27, 0.0  ;;  %v599_v43 = vmax.f32 %v343_v32, 0.0  ;;  %v344_v44 = vld [vmem:[%s3702_s1 + $0x4b0] sm:$0xff]  ;;  %v219_v45 = vld [vmem:[%s3702_s1 + $0xc8] sm:$0xff]  ;;  %v221_v46 = vld [vmem:[%s3702_s1 + $0xd8] sm:$0xff] }
  0x17   : > { %v601_v47 = vmax.f32 %v345_v33, 0.0  ;;  %v470_v48 = vmax.f32 %v214_v34, 0.0  ;;  %v472_v49 = vmax.f32 %v216_v39, 0.0  ;;  %v347_v50 = vld [vmem:[%s3702_s1 + $0x4c8] sm:$0xff]  ;;  %v349_v51 = vld [vmem:[%s3702_s1 + $0x4d8] sm:$0xff]  ;;  %v714_v52 = vpack.c.bf16 %v468_v31, %v466_v30  ;;  %v218_v55 = vld [vmem:[%s3702_s1 + $0xc0] sm:$0xff] }
  0x18   : > { %1225 = vmatpush1.bf16.msra.mxu1 %v712_v22  ;;  %v778_v53 = vpack.c.bf16 %v596_v37, %v594_v36  ;;  %v598_v54 = vmax.f32 %v342_v40, 0.0  ;;  %v220_v56 = vld [vmem:[%s3702_s1 + $0xd0] sm:$0xff]  ;;  %v346_v57 = vld [vmem:[%s3702_s1 + $0x4c0] sm:$0xff]  ;;  %v717_v58 = vpack.c.bf16 %v473_v42, %v471_v38  ;;  %v600_v59 = vmax.f32 %v344_v44, 0.0  ;;  %v223_v63 = vld [vmem:[%s3702_s1 + $0xe8] sm:$0xff] }
  0x19   : > { %1611 = vmatpush1.bf16.msra.mxu0 %v776_v28  ;;  %1226 = vmatprep.subr.bf16.mxu1 %v715_v35  ;;  %v475_v60 = vmax.f32 %v219_v45, 0.0  ;;  %v477_v61 = vmax.f32 %v221_v46, 0.0  ;;  %v348_v62 = vld [vmem:[%s3702_s1 + $0x4d0] sm:$0xff]  ;;  %v225_v0 = vld [vmem:[%s3702_s1 + $0xf8] sm:$0xff]  ;;  %v781_v1 = vpack.c.bf16 %v601_v47, %v599_v43  ;;  %v603_v2 = vmax.f32 %v347_v50, 0.0  ;;  %v351_v7 = vld [vmem:[%s3702_s1 + $0x4e8] sm:$0xff] }
  0x1a   : > { %1612 = vmatprep.subr.bf16.mxu0 %v779_v41  ;;  %v605_v3 = vmax.f32 %v349_v51, 0.0  ;;  %v716_v4 = vpack.c.bf16 %v472_v49, %v470_v48  ;;  %v474_v5 = vmax.f32 %v218_v55, 0.0  ;;  %v476_v6 = vmax.f32 %v220_v56, 0.0  ;;  %v353_v8 = vld [vmem:[%s3702_s1 + $0x4f8] sm:$0xff]  ;;  %v222_v13 = vld [vmem:[%s3702_s1 + $0xe0] sm:$0xff]  ;;  %v224_v14 = vld [vmem:[%s3702_s1 + $0xf0] sm:$0xff] }
  0x1b   : > { %v602_v9 = vmax.f32 %v346_v57, 0.0  ;;  %v604_v10 = vmax.f32 %v348_v62, 0.0  ;;  %v479_v11 = vmax.f32 %v223_v63, 0.0  ;;  %v481_v12 = vmax.f32 %v225_v0, 0.0  ;;  %v350_v17 = vld [vmem:[%s3702_s1 + $0x4e0] sm:$0xff]  ;;  %v352_v21 = vld [vmem:[%s3702_s1 + $0x4f0] sm:$0xff] }
  0x1c   : > { %1227 = vmatpush1.bf16.msra.mxu1 %v714_v52  ;;  %v780_v15 = vpack.c.bf16 %v600_v59, %v598_v54  ;;  %v719_v16 = vpack.c.bf16 %v477_v61, %v475_v60  ;;  %v783_v18 = vpack.c.bf16 %v605_v3, %v603_v2  ;;  %v607_v19 = vmax.f32 %v351_v7, 0.0  ;;  %v227_v22 = vld [vmem:[%s3702_s1 + $0x108] sm:$0xff]  ;;  %v229_v23 = vld [vmem:[%s3702_s1 + $0x118] sm:$0xff]  ;;  %v226_v28 = vld [vmem:[%s3702_s1 + $0x100] sm:$0xff] }
  0x1d   : > { %1613 = vmatpush1.bf16.msra.mxu0 %v778_v53  ;;  %1228 = vmatprep.subr.bf16.mxu1 %v717_v58  ;;  %v609_v20 = vmax.f32 %v353_v8, 0.0  ;;  %v478_v24 = vmax.f32 %v222_v13, 0.0  ;;  %v480_v25 = vmax.f32 %v224_v14, 0.0  ;;  %v355_v26 = vld [vmem:[%s3702_s1 + $0x508] sm:$0xff]  ;;  %v357_v27 = vld [vmem:[%s3702_s1 + $0x518] sm:$0xff]  ;;  %v718_v29 = vpack.c.bf16 %v476_v6, %v474_v5  ;;  %v228_v32 = vld [vmem:[%s3702_s1 + $0x110] sm:$0xff] }
  0x1e   : > { %1614 = vmatprep.subr.bf16.mxu0 %v781_v1  ;;  %v782_v30 = vpack.c.bf16 %v604_v10, %v602_v9  ;;  %v721_v31 = vpack.c.bf16 %v481_v12, %v479_v11  ;;  %v354_v33 = vld [vmem:[%s3702_s1 + $0x500] sm:$0xff]  ;;  %v356_v34 = vld [vmem:[%s3702_s1 + $0x510] sm:$0xff]  ;;  %v606_v35 = vmax.f32 %v350_v17, 0.0  ;;  %v608_v36 = vmax.f32 %v352_v21, 0.0  ;;  %v231_v39 = vld [vmem:[%s3702_s1 + $0x128] sm:$0xff] }
  0x1f   : > { %v483_v37 = vmax.f32 %v227_v22, 0.0  ;;  %v485_v38 = vmax.f32 %v229_v23, 0.0  ;;  %v233_v40 = vld [vmem:[%s3702_s1 + $0x138] sm:$0xff]  ;;  %v785_v41 = vpack.c.bf16 %v609_v20, %v607_v19  ;;  %v611_v42 = vmax.f32 %v355_v26, 0.0  ;;  %v359_v47 = vld [vmem:[%s3702_s1 + $0x528] sm:$0xff]  ;;  %v230_v53 = vld [vmem:[%s3702_s1 + $0x120] sm:$0xff] }
  0x20   : > { %1229 = vmatpush1.bf16.msra.mxu1 %v716_v4  ;;  %v613_v43 = vmax.f32 %v357_v27, 0.0  ;;  %v720_v44 = vpack.c.bf16 %v480_v25, %v478_v24  ;;  %v482_v45 = vmax.f32 %v226_v28, 0.0  ;;  %v484_v46 = vmax.f32 %v228_v32, 0.0  ;;  %v361_v48 = vld [vmem:[%s3702_s1 + $0x538] sm:$0xff]  ;;  %v232_v54 = vld [vmem:[%s3702_s1 + $0x130] sm:$0xff]  ;;  %v358_v57 = vld [vmem:[%s3702_s1 + $0x520] sm:$0xff] }
  0x21   : > { %1615 = vmatpush1.bf16.msra.mxu0 %v780_v15  ;;  %1230 = vmatprep.subr.bf16.mxu1 %v719_v16  ;;  %v610_v49 = vmax.f32 %v354_v33, 0.0  ;;  %v612_v50 = vmax.f32 %v356_v34, 0.0  ;;  %v487_v51 = vmax.f32 %v231_v39, 0.0  ;;  %v489_v52 = vmax.f32 %v233_v40, 0.0  ;;  %v360_v61 = vld [vmem:[%s3702_s1 + $0x530] sm:$0xff]  ;;  %v235_v62 = vld [vmem:[%s3702_s1 + $0x148] sm:$0xff] }
  0x22   : > { %1616 = vmatprep.subr.bf16.mxu0 %v783_v18  ;;  %v784_v55 = vpack.c.bf16 %v608_v36, %v606_v35  ;;  %v723_v56 = vpack.c.bf16 %v485_v38, %v483_v37  ;;  %v787_v58 = vpack.c.bf16 %v613_v43, %v611_v42  ;;  %v615_v59 = vmax.f32 %v359_v47, 0.0  ;;  %v237_v63 = vld [vmem:[%s3702_s1 + $0x158] sm:$0xff]  ;;  %v363_v2 = vld [vmem:[%s3702_s1 + $0x548] sm:$0xff]  ;;  %v234_v4 = vld [vmem:[%s3702_s1 + $0x140] sm:$0xff] }
  0x23   : > { %v617_v60 = vmax.f32 %v361_v48, 0.0  ;;  %v486_v0 = vmax.f32 %v230_v53, 0.0  ;;  %v488_v1 = vmax.f32 %v232_v54, 0.0  ;;  %v365_v3 = vld [vmem:[%s3702_s1 + $0x558] sm:$0xff]  ;;  %v722_v5 = vpack.c.bf16 %v484_v46, %v482_v45  ;;  %v236_v8 = vld [vmem:[%s3702_s1 + $0x150] sm:$0xff]  ;;  %v362_v9 = vld [vmem:[%s3702_s1 + $0x540] sm:$0xff] }
  0x24   : > { %1231 = vmatpush1.bf16.msra.mxu1 %v718_v29  ;;  %v786_v6 = vpack.c.bf16 %v612_v50, %v610_v49  ;;  %v725_v7 = vpack.c.bf16 %v489_v52, %v487_v51  ;;  %v364_v10 = vld [vmem:[%s3702_s1 + $0x550] sm:$0xff]  ;;  %v614_v11 = vmax.f32 %v358_v57, 0.0  ;;  %v616_v12 = vmax.f32 %v360_v61, 0.0  ;;  %v239_v15 = vld [vmem:[%s3702_s1 + $0x168] sm:$0xff]  ;;  %v241_v16 = vld [vmem:[%s3702_s1 + $0x178] sm:$0xff] }
  0x25   : > { %1617 = vmatpush1.bf16.msra.mxu0 %v782_v30  ;;  %1232 = vmatprep.subr.bf16.mxu1 %v721_v31  ;;  %v491_v13 = vmax.f32 %v235_v62, 0.0  ;;  %v493_v14 = vmax.f32 %v237_v63, 0.0  ;;  %v789_v17 = vpack.c.bf16 %v617_v60, %v615_v59  ;;  %v619_v18 = vmax.f32 %v363_v2, 0.0  ;;  %v367_v23 = vld [vmem:[%s3702_s1 + $0x568] sm:$0xff]  ;;  %v369_v24 = vld [vmem:[%s3702_s1 + $0x578] sm:$0xff]  ;;  %v238_v29 = vld [vmem:[%s3702_s1 + $0x160] sm:$0xff] }
  0x26   : > { %1618 = vmatprep.subr.bf16.mxu0 %v785_v41  ;;  %v621_v19 = vmax.f32 %v365_v3, 0.0  ;;  %v724_v20 = vpack.c.bf16 %v488_v1, %v486_v0  ;;  %v490_v21 = vmax.f32 %v234_v4, 0.0  ;;  %v492_v22 = vmax.f32 %v236_v8, 0.0  ;;  %v240_v30 = vld [vmem:[%s3702_s1 + $0x170] sm:$0xff]  ;;  %v366_v33 = vld [vmem:[%s3702_s1 + $0x560] sm:$0xff]  ;;  %v243_v38 = vld [vmem:[%s3702_s1 + $0x188] sm:$0xff] }
  0x27   : > { %v618_v25 = vmax.f32 %v362_v9, 0.0  ;;  %v620_v26 = vmax.f32 %v364_v10, 0.0  ;;  %v495_v27 = vmax.f32 %v239_v15, 0.0  ;;  %v497_v28 = vmax.f32 %v241_v16, 0.0  ;;  %v368_v37 = vld [vmem:[%s3702_s1 + $0x570] sm:$0xff]  ;;  %v245_v39 = vld [vmem:[%s3702_s1 + $0x198] sm:$0xff] }
  0x28   : > { %1233 = vmatpush1.bf16.msra.mxu1 %v720_v44  ;;  %v788_v31 = vpack.c.bf16 %v616_v12, %v614_v11  ;;  %v727_v32 = vpack.c.bf16 %v493_v14, %v491_v13  ;;  %v791_v34 = vpack.c.bf16 %v621_v19, %v619_v18  ;;  %v623_v35 = vmax.f32 %v367_v23, 0.0  ;;  %v371_v42 = vld [vmem:[%s3702_s1 + $0x588] sm:$0xff]  ;;  %v373_v43 = vld [vmem:[%s3702_s1 + $0x598] sm:$0xff]  ;;  %v242_v44 = vld [vmem:[%s3702_s1 + $0x180] sm:$0xff] }
  0x29   : > { %1619 = vmatpush1.bf16.msra.mxu0 %v784_v55  ;;  %1234 = vmatprep.subr.bf16.mxu1 %v723_v56  ;;  %v625_v36 = vmax.f32 %v369_v24, 0.0  ;;  %v494_v40 = vmax.f32 %v238_v29, 0.0  ;;  %v496_v41 = vmax.f32 %v240_v30, 0.0  ;;  %v726_v45 = vpack.c.bf16 %v492_v22, %v490_v21  ;;  %v244_v48 = vld [vmem:[%s3702_s1 + $0x190] sm:$0xff]  ;;  %v370_v49 = vld [vmem:[%s3702_s1 + $0x580] sm:$0xff]  ;;  %v247_v55 = vld [vmem:[%s3702_s1 + $0x1a8] sm:$0xff] }
  0x2a   : > { %1620 = vmatprep.subr.bf16.mxu0 %v787_v58  ;;  %v790_v46 = vpack.c.bf16 %v620_v26, %v618_v25  ;;  %v729_v47 = vpack.c.bf16 %v497_v28, %v495_v27  ;;  %v372_v50 = vld [vmem:[%s3702_s1 + $0x590] sm:$0xff]  ;;  %v622_v51 = vmax.f32 %v366_v33, 0.0  ;;  %v624_v52 = vmax.f32 %v368_v37, 0.0  ;;  %v249_v56 = vld [vmem:[%s3702_s1 + $0x1b8] sm:$0xff]  ;;  %v375_v60 = vld [vmem:[%s3702_s1 + $0x5a8] sm:$0xff] }
  0x2b   : > { %v499_v53 = vmax.f32 %v243_v38, 0.0  ;;  %v501_v54 = vmax.f32 %v245_v39, 0.0  ;;  %v793_v57 = vpack.c.bf16 %v625_v36, %v623_v35  ;;  %v627_v58 = vmax.f32 %v371_v42, 0.0  ;;  %v377_v61 = vld [vmem:[%s3702_s1 + $0x5b8] sm:$0xff]  ;;  %v246_v62 = vld [vmem:[%s3702_s1 + $0x1a0] sm:$0xff]  ;;  %v248_v2 = vld [vmem:[%s3702_s1 + $0x1b0] sm:$0xff] }
  0x2c   : > { %1235 = vmatpush1.bf16.msra.mxu1 %v722_v5  ;;  %v629_v59 = vmax.f32 %v373_v43, 0.0  ;;  %v728_v63 = vpack.c.bf16 %v496_v41, %v494_v40  ;;  %v498_v0 = vmax.f32 %v242_v44, 0.0  ;;  %v500_v1 = vmax.f32 %v244_v48, 0.0  ;;  %v835_v3 = vld [vmem:[%s2777_s6 + $0x8] sm:$0xff]  ;;  %v374_v13 = vld [vmem:[%s3702_s1 + $0x5a0] sm:$0xff]  ;;  %v253_v19 = vld [vmem:[%s3702_s1 + $0x1d8] sm:$0xff] }
  0x2d   : > { %1621 = vmatpush1.bf16.msra.mxu0 %v786_v6  ;;  %1236 = vmatprep.subr.bf16.mxu1 %v725_v7  ;;  %v843_v4 = vld [vmem:[%s2777_s6 + $0x48] sm:$0xff]  ;;  %v626_v5 = vmax.f32 %v370_v49, 0.0  ;;  %v628_v6 = vmax.f32 %v372_v50, 0.0  ;;  %v503_v7 = vmax.f32 %v247_v55, 0.0  ;;  %v505_v8 = vmax.f32 %v249_v56, 0.0  ;;  %v381_v24 = vld [vmem:[%s3702_s1 + $0x5d8] sm:$0xff] }
  0x2e   : > { %1622 = vmatprep.subr.bf16.mxu0 %v789_v17  ;;  %v839_v9 = vld [vmem:[%s2777_s6 + $0x28] sm:$0xff]  ;;  %v792_v11 = vpack.c.bf16 %v624_v52, %v622_v51  ;;  %v731_v12 = vpack.c.bf16 %v501_v54, %v499_v53  ;;  %v795_v14 = vpack.c.bf16 %v629_v59, %v627_v58  ;;  %v631_v15 = vmax.f32 %v375_v60, 0.0  ;;  %v376_v17 = vld [vmem:[%s3702_s1 + $0x5b0] sm:$0xff]  ;;  %v250_v25 = vld [vmem:[%s3702_s1 + $0x1c0] sm:$0xff] }
  0x2f   : > { %v847_v10 = vld [vmem:[%s2777_s6 + $0x68] sm:$0xff]  ;;  %v633_v16 = vmax.f32 %v377_v61, 0.0  ;;  %v502_v21 = vmax.f32 %v246_v62, 0.0  ;;  %v504_v22 = vmax.f32 %v248_v2, 0.0  ;;  %v730_v27 = vpack.c.bf16 %v500_v1, %v498_v0  ;;  %v252_v30 = vld [vmem:[%s3702_s1 + $0x1d0] sm:$0xff]  ;;  %v257_v38 = vld [vmem:[%s3702_s1 + $0x1f8] sm:$0xff] }
  0x30   : > { %1237 = vmatpush1.bf16.msra.mxu1 %v724_v20  ;;  %v251_v18 = vld [vmem:[%s3702_s1 + $0x1c8] sm:$0xff]  ;;  %v1091_v20 = vpack.c.bf16 %v843_v4, %v835_v3  ;;  %v1095_v26 = vpack.c.bf16 %v847_v10, %v839_v9  ;;  %v794_v28 = vpack.c.bf16 %v628_v6, %v626_v5  ;;  %v733_v29 = vpack.c.bf16 %v505_v8, %v503_v7  ;;  %v254_v53 = vld [vmem:[%s3702_s1 + $0x1e0] sm:$0xff]  ;;  %v256_v54 = vld [vmem:[%s3702_s1 + $0x1f0] sm:$0xff] }
  0x31   : > { %1623 = vmatpush1.bf16.msra.mxu0 %v788_v31  ;;  %1238 = vmatprep.subr.bf16.mxu1 %v727_v32  ;;  %v379_v23 = vld [vmem:[%s3702_s1 + $0x5c8] sm:$0xff]  ;;  %v378_v31 = vld [vmem:[%s3702_s1 + $0x5c0] sm:$0xff]  ;;  %v380_v32 = vld [vmem:[%s3702_s1 + $0x5d0] sm:$0xff]  ;;  %v630_v33 = vmax.f32 %v374_v13, 0.0  ;;  %v507_v35 = vmax.f32 %v251_v18, 0.0  ;;  %v509_v36 = vmax.f32 %v253_v19, 0.0  ;;  %v797_v39 = vpack.c.bf16 %v633_v16, %v631_v15 }
  0x32   : > { %1624 = vmatprep.subr.bf16.mxu0 %v791_v34  ;;  %1250 = vmatprep.mubr.bf16.mxu1 %v1091_v20  ;;  %v632_v34 = vmax.f32 %v376_v17, 0.0  ;;  %v255_v37 = vld [vmem:[%s3702_s1 + $0x1e8] sm:$0xff]  ;;  %v635_v40 = vmax.f32 %v379_v23, 0.0  ;;  %v637_v41 = vmax.f32 %v381_v24, 0.0  ;;  %v732_v42 = vpack.c.bf16 %v504_v22, %v502_v21  ;;  %v382_v55 = vld [vmem:[%s3702_s1 + $0x5e0] sm:$0xff]  ;;  %v384_v59 = vld [vmem:[%s3702_s1 + $0x5f0] sm:$0xff] }
  0x33   : > { %1636 = vmatprep.mubr.bf16.mxu0 %v1095_v26  ;;  %v506_v43 = vmax.f32 %v250_v25, 0.0  ;;  %v508_v44 = vmax.f32 %v252_v30, 0.0  ;;  %v636_v48 = vmax.f32 %v380_v32, 0.0  ;;  %v511_v49 = vmax.f32 %v255_v37, 0.0  ;;  %v259_v60 = vld [vmem:[%s3702_s1 + $0x208] sm:$0xff]  ;;  %v261_v61 = vld [vmem:[%s3702_s1 + $0x218] sm:$0xff] }
  0x34   : > { %1239 = vmatpush1.bf16.msra.mxu1 %v726_v45  ;;  %v383_v45 = vld [vmem:[%s3702_s1 + $0x5e8] sm:$0xff]  ;;  %v513_v50 = vmax.f32 %v257_v38, 0.0  ;;  %v796_v51 = vpack.c.bf16 %v632_v34, %v630_v33  ;;  %v735_v52 = vpack.c.bf16 %v509_v36, %v507_v35  ;;  %v799_v56 = vpack.c.bf16 %v637_v41, %v635_v40  ;;  %v389_v0 = vld [vmem:[%s3702_s1 + $0x618] sm:$0xff]  ;;  %v258_v5 = vld [vmem:[%s3702_s1 + $0x200] sm:$0xff] }
  0x35   : > { %1625 = vmatpush1.bf16.msra.mxu0 %v790_v46  ;;  %1240 = vmatprep.subr.bf16.mxu1 %v729_v47  ;;  %v385_v46 = vld [vmem:[%s3702_s1 + $0x5f8] sm:$0xff]  ;;  %v634_v47 = vmax.f32 %v378_v31, 0.0  ;;  %v734_v62 = vpack.c.bf16 %v508_v44, %v506_v43  ;;  %v510_v3 = vmax.f32 %v254_v53, 0.0  ;;  %v512_v4 = vmax.f32 %v256_v54, 0.0  ;;  %v260_v6 = vld [vmem:[%s3702_s1 + $0x210] sm:$0xff]  ;;  %v2874_v9 = vld [vmem:[%s2777_s6] sm:$0xff] }
  0x36   : > { %1626 = vmatprep.subr.bf16.mxu0 %v793_v57  ;;  %v639_v57 = vmax.f32 %v383_v45, 0.0  ;;  %v641_v58 = vmax.f32 %v385_v46, 0.0  ;;  %v737_v2 = vpack.c.bf16 %v513_v50, %v511_v49  ;;  %v638_v7 = vmax.f32 %v382_v55, 0.0  ;;  %v2877_v10 = vld [vmem:[%s2777_s6 + $0x40] sm:$0xff]  ;;  %v388_v18 = vld [vmem:[%s3702_s1 + $0x610] sm:$0xff]  ;;  %v263_v22 = vld [vmem:[%s3702_s1 + $0x228] sm:$0xff] }
  0x37   : > { %v798_v1 = vpack.c.bf16 %v636_v48, %v634_v47  ;;  %v640_v8 = vmax.f32 %v384_v59, 0.0  ;;  %v645_v16 = vmax.f32 %v389_v0, 0.0  ;;  %v386_v17 = vld [vmem:[%s3702_s1 + $0x600] sm:$0xff]  ;;  %v514_v20 = vmax.f32 %v258_v5, 0.0  ;;  %v265_v23 = vld [vmem:[%s3702_s1 + $0x238] sm:$0xff]  ;;  %v2898_v25 = vld [vmem:[%s2777_s6 + $0x88] sm:$0xff] }
  0x38   : > { %1241 = vmatpush1.bf16.msra.mxu1 %v728_v63  ;;  %v387_v63 = vld [vmem:[%s3702_s1 + $0x608] sm:$0xff]  ;;  %v801_v13 = vpack.c.bf16 %v641_v58, %v639_v57  ;;  %v2889_v19 = vld [vmem:[%s2777_s6 + $0x60] sm:$0xff]  ;;  %v516_v21 = vmax.f32 %v260_v6, 0.0  ;;  %v736_v24 = vpack.c.bf16 %v512_v4, %v510_v3  ;;  %v642_v32 = vmax.f32 %v386_v17, 0.0  ;;  %v264_v34 = vld [vmem:[%s3702_s1 + $0x230] sm:$0xff] }
  0x39   : > { %1627 = vmatpush1.bf16.msra.mxu0 %v792_v11  ;;  %1242 = vmatprep.subr.bf16.mxu1 %v731_v12  ;;  %v515_v11 = vmax.f32 %v259_v60, 0.0  ;;  %v517_v12 = vmax.f32 %v261_v61, 0.0  ;;  %v643_v15 = vmax.f32 %v387_v63, 0.0  ;;  %v2901_v26 = vld [vmem:[%s2777_s6 + $0xc8] sm:$0xff]  ;;  %v800_v30 = vpack.c.bf16 %v640_v8, %v638_v7  ;;  %v390_v35 = vld [vmem:[%s3702_s1 + $0x620] sm:$0xff]  ;;  %v392_v36 = vld [vmem:[%s3702_s1 + $0x630] sm:$0xff] }
  0x3a   : > { %1628 = vmatprep.subr.bf16.mxu0 %v795_v14  ;;  %v2880_v14 = vld [vmem:[%s2777_s6 + $0x20] sm:$0xff]  ;;  %v644_v33 = vmax.f32 %v388_v18, 0.0  ;;  %v1090_v37 = vpack.c.bf16 %v2877_v10, %v2874_v9  ;;  %v519_v40 = vmax.f32 %v263_v22, 0.0  ;;  %v521_v41 = vmax.f32 %v265_v23, 0.0  ;;  %v269_v43 = vld [vmem:[%s3702_s1 + $0x258] sm:$0xff]  ;;  %v863_v46 = vld [vmem:[%s2777_s6 + $0xe8] sm:$0xff] }
  0x3b   : > { %v739_v31 = vpack.c.bf16 %v517_v12, %v515_v11  ;;  %v803_v38 = vpack.c.bf16 %v645_v16, %v643_v15  ;;  %v1094_v44 = vpack.c.bf16 %v2889_v19, %v2880_v14  ;;  %v738_v45 = vpack.c.bf16 %v516_v21, %v514_v20  ;;  %v395_v49 = vld [vmem:[%s3702_s1 + $0x648] sm:$0xff]  ;;  %v397_v50 = vld [vmem:[%s3702_s1 + $0x658] sm:$0xff]  ;;  %v266_v59 = vld [vmem:[%s3702_s1 + $0x240] sm:$0xff] }
  0x3c   : > { %1243 = vmatpush1.bf16.msra.mxu1 %v730_v27  ;;  %v391_v27 = vld [vmem:[%s3702_s1 + $0x628] sm:$0xff]  ;;  %v646_v53 = vmax.f32 %v390_v35, 0.0  ;;  %v648_v54 = vmax.f32 %v392_v36, 0.0  ;;  %v802_v55 = vpack.c.bf16 %v644_v33, %v642_v32  ;;  %v525_v58 = vmax.f32 %v269_v43, 0.0  ;;  %v2945_v61 = vld [vmem:[%s2777_s6 + $0x80] sm:$0xff]  ;;  %v396_v4 = vld [vmem:[%s3702_s1 + $0x650] sm:$0xff] }
  0x3d   : > { %1629 = vmatpush1.bf16.msra.mxu0 %v794_v28  ;;  %1244 = vmatprep.subr.bf16.mxu1 %v733_v29  ;;  %v393_v28 = vld [vmem:[%s3702_s1 + $0x638] sm:$0xff]  ;;  %v262_v29 = vld [vmem:[%s3702_s1 + $0x220] sm:$0xff]  ;;  %v647_v47 = vmax.f32 %v391_v27, 0.0  ;;  %v741_v63 = vpack.c.bf16 %v521_v41, %v519_v40  ;;  %v651_v0 = vmax.f32 %v395_v49, 0.0  ;;  %v271_v8 = vld [vmem:[%s3702_s1 + $0x268] sm:$0xff]  ;;  %v652_v20 = vmax.f32 %v396_v4, 0.0 }
  0x3e   : > { %1630 = vmatprep.subr.bf16.mxu0 %v797_v39  ;;  %v855_v39 = vld [vmem:[%s2777_s6 + $0xa8] sm:$0xff]  ;;  %v649_v48 = vmax.f32 %v393_v28, 0.0  ;;  %v394_v3 = vld [vmem:[%s3702_s1 + $0x640] sm:$0xff]  ;;  %v273_v9 = vld [vmem:[%s3702_s1 + $0x278] sm:$0xff]  ;;  %v804_v11 = vpack.c.bf16 %v648_v54, %v646_v53 }
  0x3f   : > { %v1103_v60 = vpack.c.bf16 %v863_v46, %v855_v39  ;;  %v2960_v5 = vld [vmem:[%s2777_s6 + $0xa0] sm:$0xff]  ;;  %v867_v12 = vld [vmem:[%s2777_s6 + $0x108] sm:$0xff]  ;;  %v401_v15 = vld [vmem:[%s3702_s1 + $0x678] sm:$0xff]  ;;  %v650_v19 = vmax.f32 %v394_v3, 0.0  ;;  %v529_v27 = vmax.f32 %v273_v9, 0.0 }
  0x40   : > { %1245 = vmatpush1.bf16.msra.mxu1 %v732_v42  ;;  %v267_v42 = vld [vmem:[%s3702_s1 + $0x248] sm:$0xff]  ;;  %v2963_v6 = vld [vmem:[%s2777_s6 + $0xe0] sm:$0xff]  ;;  %v805_v7 = vpack.c.bf16 %v649_v48, %v647_v47  ;;  %v272_v22 = vld [vmem:[%s3702_s1 + $0x270] sm:$0xff] }
  0x41   : > { %1631 = vmatpush1.bf16.msra.mxu0 %v796_v51  ;;  %1246 = vmatprep.subr.bf16.mxu1 %v735_v52  ;;  %v518_v51 = vmax.f32 %v262_v29, 0.0  ;;  %v520_v52 = vmax.f32 %v264_v34, 0.0  ;;  %v523_v57 = vmax.f32 %v267_v42, 0.0  ;;  %v399_v14 = vld [vmem:[%s3702_s1 + $0x668] sm:$0xff]  ;;  %v270_v21 = vld [vmem:[%s3702_s1 + $0x260] sm:$0xff]  ;;  %v400_v32 = vld [vmem:[%s3702_s1 + $0x670] sm:$0xff]  ;;  %v1102_v35 = vpack.c.bf16 %v2963_v6, %v2960_v5 }
  0x42   : > { %1632 = vmatprep.subr.bf16.mxu0 %v799_v56  ;;  %v1099_v56 = vpack.c.bf16 %v2901_v26, %v2898_v25  ;;  %v875_v16 = vld [vmem:[%s2777_s6 + $0x148] sm:$0xff]  ;;  %v527_v26 = vmax.f32 %v271_v8, 0.0  ;;  %v398_v28 = vld [vmem:[%s3702_s1 + $0x660] sm:$0xff]  ;;  %v277_v34 = vld [vmem:[%s3702_s1 + $0x298] sm:$0xff]  ;;  %v806_v43 = vpack.c.bf16 %v652_v20, %v650_v19  ;;  %v656_v49 = vmax.f32 %v400_v32, 0.0 }
  0x43   : > { %v740_v10 = vpack.c.bf16 %v520_v52, %v518_v51  ;;  %v743_v17 = vpack.c.bf16 %v525_v58, %v523_v57  ;;  %v871_v23 = vld [vmem:[%s2777_s6 + $0x128] sm:$0xff]  ;;  %v1107_v36 = vpack.c.bf16 %v875_v16, %v867_v12  ;;  %v405_v40 = vld [vmem:[%s3702_s1 + $0x698] sm:$0xff]  ;;  %v3013_v46 = vld [vmem:[%s2777_s6 + $0x100] sm:$0xff]  ;;  %v533_v51 = vmax.f32 %v277_v34, 0.0 }
  0x44   : > { %1247 = vmatpush1.bf16.msra.mxu1 %v734_v62  ;;  %v2948_v62 = vld [vmem:[%s2777_s6 + $0xc0] sm:$0xff]  ;;  %v275_v33 = vld [vmem:[%s3702_s1 + $0x288] sm:$0xff]  ;;  %v745_v48 = vpack.c.bf16 %v529_v27, %v527_v26  ;;  %v276_v52 = vld [vmem:[%s3702_s1 + $0x290] sm:$0xff] }
  0x45   : > { %1633 = vmatpush1.bf16.msra.mxu0 %v798_v1  ;;  %1248 = vmatprep.subr.bf16.mxu1 %v737_v2  ;;  %v653_v1 = vmax.f32 %v397_v50, 0.0  ;;  %v268_v2 = vld [vmem:[%s3702_s1 + $0x250] sm:$0xff]  ;;  %v1098_v29 = vpack.c.bf16 %v2948_v62, %v2945_v61  ;;  %v403_v39 = vld [vmem:[%s3702_s1 + $0x688] sm:$0xff]  ;;  %v3016_v47 = vld [vmem:[%s2777_s6 + $0x140] sm:$0xff]  ;;  %v531_v50 = vmax.f32 %v275_v33, 0.0  ;;  %v532_v4 = vmax.f32 %v276_v52, 0.0 }
  0x46   : > { %1634 = vmatprep.subr.bf16.mxu0 %v801_v13  ;;  %v522_v13 = vmax.f32 %v266_v59, 0.0  ;;  %v524_v18 = vmax.f32 %v268_v2, 0.0  ;;  %v402_v53 = vld [vmem:[%s3702_s1 + $0x680] sm:$0xff]  ;;  %v404_v54 = vld [vmem:[%s3702_s1 + $0x690] sm:$0xff]  ;;  %v3034_v57 = vld [vmem:[%s2777_s6 + $0x188] sm:$0xff]  ;;  %v659_v59 = vmax.f32 %v403_v39, 0.0  ;;  %v1106_v16 = vpack.c.bf16 %v3016_v47, %v3013_v46 }
  0x47   : > { %v807_v25 = vpack.c.bf16 %v653_v1, %v651_v0  ;;  %v279_v61 = vld [vmem:[%s3702_s1 + $0x2a8] sm:$0xff]  ;;  %v281_v62 = vld [vmem:[%s3702_s1 + $0x2b8] sm:$0xff]  ;;  %v658_v5 = vmax.f32 %v402_v53, 0.0  ;;  %v660_v6 = vmax.f32 %v404_v54, 0.0  ;;  %v280_v8 = vld [vmem:[%s3702_s1 + $0x2b0] sm:$0xff]  ;;  %v747_v12 = vpack.c.bf16 %v533_v51, %v531_v50 }
  0x48   : > { %1249 = vmatpush1.bf16.msra.mxu1 %v736_v24  ;;  %v879_v24 = vld [vmem:[%s2777_s6 + $0x168] sm:$0xff]  ;;  %v742_v42 = vpack.c.bf16 %v524_v18, %v522_v13  ;;  %v409_v2 = vld [vmem:[%s3702_s1 + $0x6b8] sm:$0xff]  ;;  %v535_v13 = vmax.f32 %v279_v61, 0.0  ;;  %v408_v20 = vld [vmem:[%s3702_s1 + $0x6b0] sm:$0xff]  ;;  %v536_v26 = vmax.f32 %v280_v8, 0.0 }
  0x49   : > { %1635 = vmatpush1.bf16.msra.mxu0 %v800_v30  ;;  %1411 = vmatprep.subr.bf16.mxu1 %v739_v31  ;;  %v655_v30 = vmax.f32 %v399_v14, 0.0  ;;  %v657_v31 = vmax.f32 %v401_v15, 0.0  ;;  %v1111_v41 = vpack.c.bf16 %v879_v24, %v871_v23  ;;  %v407_v1 = vld [vmem:[%s3702_s1 + $0x6a8] sm:$0xff]  ;;  %v537_v14 = vmax.f32 %v281_v62, 0.0  ;;  %v3062_v15 = vld [vmem:[%s3702_s1 + $0x6a0] sm:$0xff]  ;;  %v284_v34 = vld [vmem:[%s3702_s1 + $0x2d0] sm:$0xff] }
  0x4a   : > { %1797 = vmatprep.subr.bf16.mxu0 %v803_v38  ;;  %v528_v38 = vmax.f32 %v272_v22, 0.0  ;;  %v887_v9 = vld [vmem:[%s2777_s6 + $0x1a8] sm:$0xff]  ;;  %v663_v18 = vmax.f32 %v407_v1, 0.0  ;;  %v665_v19 = vmax.f32 %v409_v2, 0.0  ;;  %v285_v22 = vld [vmem:[%s3702_s1 + $0x2d8] sm:$0xff]  ;;  %v662_v32 = vmax.f32 %v3062_v15, 0.0 }
  0x4b   : > { %1251 = vmatmul.mubr.bf16.vlgmr.msra.gmra.mrb[0].mxu1 %v1090_v37  ;;  %v526_v37 = vmax.f32 %v270_v21, 0.0  ;;  %v809_v58 = vpack.c.bf16 %v657_v31, %v655_v30  ;;  %v283_v21 = vld [vmem:[%s3702_s1 + $0x2c8] sm:$0xff]  ;;  %v810_v31 = vpack.c.bf16 %v660_v6, %v658_v5  ;;  %v282_v33 = vld [vmem:[%s3702_s1 + $0x2c0] sm:$0xff]  ;;  %v664_v39 = vmax.f32 %v408_v20, 0.0  ;;  %v288_v62 = vld [vmem:[%s3702_s1 + $0x2f0] sm:$0xff] }
  0x4c   : > { %1637 = vmatmul.mubr.bf16.vlgmr.msra.gmra.mrb[0].mxu0 %v1094_v44  ;;  %1412 = vmatpush1.bf16.msra.mxu1 %v738_v45  ;;  %v654_v44 = vmax.f32 %v398_v28, 0.0  ;;  %v274_v45 = vld [vmem:[%s3702_s1 + $0x280] sm:$0xff]  ;;  %v411_v27 = vld [vmem:[%s3702_s1 + $0x6c8] sm:$0xff]  ;;  %v413_v28 = vld [vmem:[%s3702_s1 + $0x6d8] sm:$0xff]  ;;  %v538_v53 = vmax.f32 %v282_v33, 0.0  ;;  %v540_v54 = vmax.f32 %v284_v34, 0.0 }
  0x4d   : > { %1798 = vmatpush1.bf16.msra.mxu0 %v802_v55  ;;  %1260 = vmatprep.mubr.bf16.mxu1 %v1099_v56  ;;  %v3028_v55 = vld [vmem:[%s2777_s6 + $0x120] sm:$0xff]  ;;  %v744_v0 = vpack.c.bf16 %v528_v38, %v526_v37  ;;  %v530_v3 = vmax.f32 %v274_v45, 0.0  ;;  %v749_v38 = vpack.c.bf16 %v537_v14, %v535_v13  ;;  %v3117_v47 = vld [vmem:[%s2777_s6 + $0x208] sm:$0xff]  ;;  %v669_v50 = vmax.f32 %v413_v28, 0.0  ;;  %v416_v8 = vld [vmem:[%s3702_s1 + $0x6f0] sm:$0xff] }
  0x4e   : > { %1646 = vmatprep.mubr.bf16.mxu0 %v1103_v60  ;;  %1413 = vmatprep.subr.bf16.mxu1 %v741_v63  ;;  %v3031_v56 = vld [vmem:[%s2777_s6 + $0x160] sm:$0xff]  ;;  %v661_v60 = vmax.f32 %v405_v40, 0.0  ;;  %v3043_v63 = vld [vmem:[%s2777_s6 + $0x1c8] sm:$0xff]  ;;  %v539_v40 = vmax.f32 %v283_v21, 0.0  ;;  %v812_v1 = vpack.c.bf16 %v664_v39, %v662_v32  ;;  %v544_v14 = vmax.f32 %v288_v62, 0.0 }
  0x4f   : > { %1799 = vmatprep.subr.bf16.mxu0 %v805_v7  ;;  %v278_v7 = vld [vmem:[%s3702_s1 + $0x2a0] sm:$0xff]  ;;  %v1110_v23 = vpack.c.bf16 %v3031_v56, %v3028_v55  ;;  %v1115_v24 = vpack.c.bf16 %v3043_v63, %v3034_v57  ;;  %v746_v30 = vpack.c.bf16 %v532_v4, %v530_v3  ;;  %v3120_v51 = vld [vmem:[%s2777_s6 + $0x248] sm:$0xff]  ;;  %v417_v56 = vld [vmem:[%s3702_s1 + $0x6f8] sm:$0xff] }
  0x50   : > { %1414 = vmatpush1.bf16.msra.mxu1 %v740_v10  ;;  %v895_v10 = vld [vmem:[%s2777_s6 + $0x1e8] sm:$0xff]  ;;  %v3099_v37 = vld [vmem:[%s2777_s6 + $0x1c0] sm:$0xff] }
  0x51   : > { %1800 = vmatpush1.bf16.msra.mxu0 %v804_v11  ;;  %1415 = vmatprep.subr.bf16.mxu1 %v743_v17  ;;  %v808_v11 = vpack.c.bf16 %v656_v49, %v654_v44  ;;  %v811_v17 = vpack.c.bf16 %v661_v60, %v659_v59  ;;  %v289_v44 = vld [vmem:[%s3702_s1 + $0x2f8] sm:$0xff]  ;;  %v3111_v45 = vld [vmem:[%s2777_s6 + $0x1a0] sm:$0xff]  ;;  %v667_v49 = vmax.f32 %v411_v27, 0.0  ;;  %v415_v55 = vld [vmem:[%s3702_s1 + $0x6e8] sm:$0xff] }
  0x52   : > { %1801 = vmatprep.subr.bf16.mxu0 %v807_v25  ;;  %v534_v25 = vmax.f32 %v278_v7, 0.0  ;;  %v3114_v46 = vld [vmem:[%s2777_s6 + $0x1e0] sm:$0xff]  ;;  %v545_v60 = vmax.f32 %v289_v44, 0.0  ;;  %v903_v63 = vld [vmem:[%s2777_s6 + $0x228] sm:$0xff]  ;;  %v671_v6 = vmax.f32 %v415_v55, 0.0  ;;  %v673_v7 = vmax.f32 %v417_v56, 0.0 }
  0x53   : > { %1261 = vmatmul.mubr.bf16.gmra.mrb[4].mxu1 %v1098_v29  ;;  %v1119_v29 = vpack.c.bf16 %v895_v10, %v887_v9  ;;  %v286_v61 = vld [vmem:[%s3702_s1 + $0x2e0] sm:$0xff]  ;;  %v815_v5 = vpack.c.bf16 %v669_v50, %v667_v49  ;;  %v291_v9 = vld [vmem:[%s3702_s1 + $0x308] sm:$0xff]  ;;  %v293_v10 = vld [vmem:[%s3702_s1 + $0x318] sm:$0xff] }
  0x54   : > { %1647 = vmatmul.mubr.bf16.gmra.mrb[4].mxu0 %v1102_v35  ;;  %1270 = vmatprep.mubr.bf16.mxu1 %v1107_v36  ;;  %v410_v35 = vld [vmem:[%s3702_s1 + $0x6c0] sm:$0xff]  ;;  %v748_v52 = vpack.c.bf16 %v536_v26, %v534_v25  ;;  %v542_v13 = vmax.f32 %v286_v61, 0.0  ;;  %v419_v15 = vld [vmem:[%s3702_s1 + $0x708] sm:$0xff]  ;;  %v672_v26 = vmax.f32 %v416_v8, 0.0  ;;  %v547_v27 = vmax.f32 %v291_v9, 0.0  ;;  %v297_v44 = vld [vmem:[%s3702_s1 + $0x338] sm:$0xff] }
  0x55   : > { %1656 = vmatprep.mubr.bf16.mxu0 %v1111_v41  ;;  %1416 = vmatpush1.bf16.msra.mxu1 %v742_v42  ;;  %v3096_v36 = vld [vmem:[%s2777_s6 + $0x180] sm:$0xff]  ;;  %v541_v41 = vmax.f32 %v285_v22, 0.0  ;;  %v412_v42 = vld [vmem:[%s3702_s1 + $0x6d0] sm:$0xff]  ;;  %v666_v57 = vmax.f32 %v410_v35, 0.0  ;;  %v549_v28 = vmax.f32 %v293_v10, 0.0  ;;  %v3185_v33 = vld [vmem:[%s2777_s6 + $0x288] sm:$0xff]  ;;  %v817_v35 = vpack.c.bf16 %v673_v7, %v671_v6 }
  0x56   : > { %1802 = vmatpush1.bf16.msra.mxu0 %v806_v43  ;;  %1417 = vmatprep.subr.bf16.mxu1 %v745_v48  ;;  %v287_v43 = vld [vmem:[%s3702_s1 + $0x2e8] sm:$0xff]  ;;  %v813_v48 = vpack.c.bf16 %v665_v19, %v663_v18  ;;  %v414_v3 = vld [vmem:[%s3702_s1 + $0x6e0] sm:$0xff]  ;;  %v1114_v4 = vpack.c.bf16 %v3099_v37, %v3096_v36  ;;  %v750_v18 = vpack.c.bf16 %v540_v54, %v538_v53  ;;  %v292_v22 = vld [vmem:[%s3702_s1 + $0x310] sm:$0xff]  ;;  %v675_v36 = vmax.f32 %v419_v15, 0.0 }
  0x57   : > { %1803 = vmatprep.subr.bf16.mxu0 %v809_v58  ;;  %v668_v58 = vmax.f32 %v412_v42, 0.0  ;;  %v543_v59 = vmax.f32 %v287_v43, 0.0  ;;  %v751_v2 = vpack.c.bf16 %v541_v41, %v539_v40  ;;  %v290_v21 = vld [vmem:[%s3702_s1 + $0x300] sm:$0xff]  ;;  %v670_v25 = vmax.f32 %v414_v3, 0.0  ;;  %v3188_v34 = vld [vmem:[%s2777_s6 + $0x2c8] sm:$0xff]  ;;  %v425_v50 = vld [vmem:[%s3702_s1 + $0x738] sm:$0xff] }
  0x58   : > { %v3182_v32 = vld [vmem:[%s2777_s6 + $0x260] sm:$0xff]  ;;  %v919_v39 = vld [vmem:[%s2777_s6 + $0x2a8] sm:$0xff]  ;;  %v752_v41 = vpack.c.bf16 %v544_v14, %v542_v13  ;;  %v546_v42 = vmax.f32 %v290_v21, 0.0  ;;  %v548_v43 = vmax.f32 %v292_v22, 0.0  ;;  %v296_v54 = vld [vmem:[%s3702_s1 + $0x330] sm:$0xff]  ;;  %v1131_v62 = vpack.c.bf16 %v3188_v34, %v3185_v33 }
  0x59   : > { %1418 = vmatpush1.bf16.msra.mxu1 %v744_v0  ;;  %v911_v0 = vld [vmem:[%s2777_s6 + $0x268] sm:$0xff]  ;;  %v814_v19 = vpack.c.bf16 %v668_v58, %v666_v57  ;;  %v753_v20 = vpack.c.bf16 %v545_v60, %v543_v59  ;;  %v294_v53 = vld [vmem:[%s3702_s1 + $0x320] sm:$0xff]  ;;  %v681_v58 = vmax.f32 %v425_v50, 0.0  ;;  %v424_v60 = vld [vmem:[%s3702_s1 + $0x730] sm:$0xff] }
  0x5a   : > { %1804 = vmatpush1.bf16.msra.mxu0 %v808_v11  ;;  %1419 = vmatprep.subr.bf16.mxu1 %v747_v12  ;;  %v1118_v11 = vpack.c.bf16 %v3114_v46, %v3111_v45  ;;  %v1123_v12 = vpack.c.bf16 %v3120_v51, %v3117_v47  ;;  %v927_v40 = vld [vmem:[%s2777_s6 + $0x2e8] sm:$0xff]  ;;  %v816_v51 = vpack.c.bf16 %v672_v26, %v670_v25  ;;  %v422_v59 = vld [vmem:[%s3702_s1 + $0x720] sm:$0xff]  ;;  %v550_v3 = vmax.f32 %v294_v53, 0.0  ;;  %v301_v6 = vld [vmem:[%s3702_s1 + $0x358] sm:$0xff] }
  0x5b   : > { %1271 = vmatmul.mubr.bf16.gmra.mrb[8].mxu1 %v1106_v16  ;;  %1805 = vmatprep.subr.bf16.mxu0 %v811_v17  ;;  %v421_v16 = vld [vmem:[%s3702_s1 + $0x718] sm:$0xff]  ;;  %v1127_v17 = vpack.c.bf16 %v911_v0, %v903_v63  ;;  %v423_v49 = vld [vmem:[%s3702_s1 + $0x728] sm:$0xff]  ;;  %v1135_v63 = vpack.c.bf16 %v927_v40, %v919_v39  ;;  %v754_v0 = vpack.c.bf16 %v548_v43, %v546_v42  ;;  %v3229_v7 = vld [vmem:[%s2777_s6 + $0x280] sm:$0xff]  ;;  %v678_v9 = vmax.f32 %v422_v59, 0.0 }
  0x5c   : > { %1657 = vmatmul.mubr.bf16.gmra.mrb[8].mxu0 %v1110_v23  ;;  %1280 = vmatprep.mubr.bf16.mxu1 %v1115_v24  ;;  %v3167_v23 = vld [vmem:[%s2777_s6 + $0x200] sm:$0xff]  ;;  %v677_v37 = vmax.f32 %v421_v16, 0.0  ;;  %v679_v57 = vmax.f32 %v423_v49, 0.0  ;;  %v680_v10 = vmax.f32 %v424_v60, 0.0  ;;  %v427_v13 = vld [vmem:[%s3702_s1 + $0x748] sm:$0xff]  ;;  %v429_v14 = vld [vmem:[%s3702_s1 + $0x758] sm:$0xff] }
  0x5d   : > { %1666 = vmatprep.mubr.bf16.mxu0 %v1119_v29  ;;  %1420 = vmatpush1.bf16.msra.mxu1 %v746_v30  ;;  %v3170_v24 = vld [vmem:[%s2777_s6 + $0x240] sm:$0xff]  ;;  %v420_v30 = vld [vmem:[%s3702_s1 + $0x710] sm:$0xff]  ;;  %v939_v25 = vld [vmem:[%s2777_s6 + $0x348] sm:$0xff] }
  0x5e   : > { %1806 = vmatpush1.bf16.msra.mxu0 %v810_v31  ;;  %1421 = vmatprep.subr.bf16.mxu1 %v749_v38  ;;  %v418_v29 = vld [vmem:[%s3702_s1 + $0x700] sm:$0xff]  ;;  %v295_v38 = vld [vmem:[%s3702_s1 + $0x328] sm:$0xff]  ;;  %v676_v46 = vmax.f32 %v420_v30, 0.0  ;;  %v1122_v55 = vpack.c.bf16 %v3170_v24, %v3167_v23  ;;  %v819_v56 = vpack.c.bf16 %v677_v37, %v675_v36  ;;  %v821_v16 = vpack.c.bf16 %v681_v58, %v679_v57  ;;  %v428_v24 = vld [vmem:[%s3702_s1 + $0x750] sm:$0xff] }
  0x5f   : > { %1807 = vmatprep.subr.bf16.mxu0 %v813_v48  ;;  %v3179_v31 = vld [vmem:[%s2777_s6 + $0x220] sm:$0xff]  ;;  %v674_v45 = vmax.f32 %v418_v29, 0.0  ;;  %v551_v47 = vmax.f32 %v295_v38, 0.0  ;;  %v553_v48 = vmax.f32 %v297_v44, 0.0  ;;  %v931_v23 = vld [vmem:[%s2777_s6 + $0x308] sm:$0xff]  ;;  %v684_v34 = vmax.f32 %v428_v24, 0.0 }
  0x60   : > { %v1126_v61 = vpack.c.bf16 %v3182_v32, %v3179_v31  ;;  %v3232_v8 = vld [vmem:[%s2777_s6 + $0x2c0] sm:$0xff]  ;;  %v935_v26 = vld [vmem:[%s2777_s6 + $0x328] sm:$0xff]  ;;  %v820_v31 = vpack.c.bf16 %v680_v10, %v678_v9  ;;  %v305_v36 = vld [vmem:[%s3702_s1 + $0x378] sm:$0xff]  ;;  %v1139_v43 = vpack.c.bf16 %v939_v25, %v931_v23 }
  0x61   : > { %1422 = vmatpush1.bf16.msra.mxu1 %v748_v52  ;;  %v755_v52 = vpack.c.bf16 %v549_v28, %v547_v27  ;;  %v3241_v15 = vld [vmem:[%s2777_s6 + $0x2a0] sm:$0xff]  ;;  %v943_v27 = vld [vmem:[%s2777_s6 + $0x368] sm:$0xff]  ;;  %v1130_v37 = vpack.c.bf16 %v3232_v8, %v3229_v7  ;;  %v561_v40 = vmax.f32 %v305_v36, 0.0 }
  0x62   : > { %1808 = vmatpush1.bf16.msra.mxu0 %v812_v1  ;;  %1423 = vmatprep.subr.bf16.mxu1 %v751_v2  ;;  %v818_v1 = vpack.c.bf16 %v676_v46, %v674_v45  ;;  %v757_v2 = vpack.c.bf16 %v553_v48, %v551_v47  ;;  %v426_v21 = vld [vmem:[%s3702_s1 + $0x740] sm:$0xff]  ;;  %v1143_v44 = vpack.c.bf16 %v943_v27, %v935_v26  ;;  %v433_v45 = vld [vmem:[%s3702_s1 + $0x778] sm:$0xff]  ;;  %v304_v48 = vld [vmem:[%s3702_s1 + $0x370] sm:$0xff] }
  0x63   : > { %1281 = vmatmul.mubr.bf16.gmra.mrb[12].mxu1 %v1114_v4  ;;  %1809 = vmatprep.subr.bf16.mxu0 %v815_v5  ;;  %v552_v4 = vmax.f32 %v296_v54, 0.0  ;;  %v299_v5 = vld [vmem:[%s3702_s1 + $0x348] sm:$0xff]  ;;  %v926_v22 = vld [vmem:[%s2777_s6 + $0x2e0] sm:$0xff]  ;;  %v682_v33 = vmax.f32 %v426_v21, 0.0  ;;  %v689_v50 = vmax.f32 %v433_v45, 0.0  ;;  %v432_v54 = vld [vmem:[%s3702_s1 + $0x770] sm:$0xff] }
  0x64   : > { %1667 = vmatmul.mubr.bf16.gmra.mrb[12].mxu0 %v1118_v11  ;;  %1290 = vmatprep.mubr.bf16.mxu1 %v1123_v12  ;;  %v555_v11 = vmax.f32 %v299_v5, 0.0  ;;  %v557_v12 = vmax.f32 %v301_v6, 0.0  ;;  %v1134_v42 = vpack.c.bf16 %v926_v22, %v3241_v15  ;;  %v302_v47 = vld [vmem:[%s3702_s1 + $0x360] sm:$0xff]  ;;  %v688_v60 = vmax.f32 %v432_v54, 0.0  ;;  %v309_v5 = vld [vmem:[%s3702_s1 + $0x398] sm:$0xff]  ;;  %v435_v10 = vld [vmem:[%s3702_s1 + $0x788] sm:$0xff] }
  0x65   : > { %1676 = vmatprep.mubr.bf16.mxu0 %v1127_v17  ;;  %1424 = vmatpush1.bf16.msra.mxu1 %v750_v18  ;;  %v683_v17 = vmax.f32 %v427_v13, 0.0  ;;  %v685_v18 = vmax.f32 %v429_v14, 0.0  ;;  %v756_v28 = vpack.c.bf16 %v552_v4, %v550_v3  ;;  %v430_v53 = vld [vmem:[%s3702_s1 + $0x760] sm:$0xff]  ;;  %v822_v57 = vpack.c.bf16 %v684_v34, %v682_v33  ;;  %v951_v3 = vld [vmem:[%s2777_s6 + $0x3a8] sm:$0xff] }
  0x66   : > { %1810 = vmatpush1.bf16.msra.mxu0 %v814_v19  ;;  %1425 = vmatprep.subr.bf16.mxu1 %v753_v20  ;;  %v298_v19 = vld [vmem:[%s3702_s1 + $0x340] sm:$0xff]  ;;  %v300_v20 = vld [vmem:[%s3702_s1 + $0x350] sm:$0xff]  ;;  %v759_v32 = vpack.c.bf16 %v557_v12, %v555_v11  ;;  %v686_v59 = vmax.f32 %v430_v53, 0.0  ;;  %v959_v4 = vld [vmem:[%s2777_s6 + $0x3e8] sm:$0xff]  ;;  %v565_v9 = vmax.f32 %v309_v5, 0.0  ;;  %v691_v14 = vmax.f32 %v435_v10, 0.0 }
  0x67   : > { %1811 = vmatprep.subr.bf16.mxu0 %v817_v35  ;;  %v554_v29 = vmax.f32 %v298_v19, 0.0  ;;  %v556_v30 = vmax.f32 %v300_v20, 0.0  ;;  %v303_v35 = vld [vmem:[%s3702_s1 + $0x368] sm:$0xff]  ;;  %v823_v38 = vpack.c.bf16 %v685_v18, %v683_v17  ;;  %v437_v11 = vld [vmem:[%s3702_s1 + $0x798] sm:$0xff]  ;;  %v306_v12 = vld [vmem:[%s3702_s1 + $0x380] sm:$0xff]  ;;  %v1151_v27 = vpack.c.bf16 %v959_v4, %v951_v3 }
  0x68   : > { %v559_v39 = vmax.f32 %v303_v35, 0.0  ;;  %v824_v13 = vpack.c.bf16 %v688_v60, %v686_v59  ;;  %v693_v15 = vmax.f32 %v437_v11, 0.0  ;;  %v562_v17 = vmax.f32 %v306_v12, 0.0  ;;  %v434_v18 = vld [vmem:[%s3702_s1 + $0x780] sm:$0xff]  ;;  %v436_v19 = vld [vmem:[%s3702_s1 + $0x790] sm:$0xff]  ;;  %v439_v36 = vld [vmem:[%s3702_s1 + $0x7a8] sm:$0xff] }
  0x69   : > { %1426 = vmatpush1.bf16.msra.mxu1 %v752_v41  ;;  %v431_v41 = vld [vmem:[%s3702_s1 + $0x768] sm:$0xff]  ;;  %v758_v49 = vpack.c.bf16 %v556_v30, %v554_v29  ;;  %v690_v22 = vmax.f32 %v434_v18, 0.0  ;;  %v692_v23 = vmax.f32 %v436_v19, 0.0  ;;  %v313_v30 = vld [vmem:[%s3702_s1 + $0x3b8] sm:$0xff]  ;;  %v314_v5 = vld [vmem:[%s3702_s1 + $0x3c0] sm:$0xff] }
  0x6a   : > { %1812 = vmatpush1.bf16.msra.mxu0 %v816_v51  ;;  %1427 = vmatprep.subr.bf16.mxu1 %v755_v52  ;;  %v687_v46 = vmax.f32 %v431_v41, 0.0  ;;  %v558_v51 = vmax.f32 %v302_v47, 0.0  ;;  %v560_v52 = vmax.f32 %v304_v48, 0.0  ;;  %v761_v58 = vpack.c.bf16 %v561_v40, %v559_v39  ;;  %v311_v29 = vld [vmem:[%s3702_s1 + $0x3a8] sm:$0xff]  ;;  %v310_v41 = vld [vmem:[%s3702_s1 + $0x3a0] sm:$0xff]  ;;  %v445_v3 = vld [vmem:[%s3702_s1 + $0x7d8] sm:$0xff] }
  0x6b   : > { %1291 = vmatmul.mubr.bf16.gmra.mrb[16].mxu1 %v1122_v55  ;;  %1813 = vmatprep.subr.bf16.mxu0 %v819_v56  ;;  %v930_v55 = vld [vmem:[%s2777_s6 + $0x300] sm:$0xff]  ;;  %v827_v26 = vpack.c.bf16 %v693_v15, %v691_v14  ;;  %v826_v33 = vpack.c.bf16 %v692_v23, %v690_v22  ;;  %v567_v34 = vmax.f32 %v311_v29, 0.0  ;;  %v569_v35 = vmax.f32 %v313_v30, 0.0  ;;  %v963_v45 = vld [vmem:[%s2777_s6 + $0x408] sm:$0xff]  ;;  %v444_v12 = vld [vmem:[%s3702_s1 + $0x7d0] sm:$0xff] }
  0x6c   : > { %1677 = vmatmul.mubr.bf16.gmra.mrb[16].mxu0 %v1126_v61  ;;  %1300 = vmatprep.mubr.bf16.mxu1 %v1131_v62  ;;  %v938_v56 = vld [vmem:[%s2777_s6 + $0x340] sm:$0xff]  ;;  %v760_v8 = vpack.c.bf16 %v560_v52, %v558_v51  ;;  %v695_v39 = vmax.f32 %v439_v36, 0.0  ;;  %v566_v47 = vmax.f32 %v310_v41, 0.0  ;;  %v971_v51 = vld [vmem:[%s2777_s6 + $0x448] sm:$0xff]  ;;  %v320_v36 = vld [vmem:[%s3702_s1 + $0x3f0] sm:$0xff] }
  0x6d   : > { %1686 = vmatprep.mubr.bf16.mxu0 %v1135_v63  ;;  %1428 = vmatpush1.bf16.msra.mxu1 %v754_v0  ;;  %v934_v61 = vld [vmem:[%s2777_s6 + $0x320] sm:$0xff]  ;;  %v947_v63 = vld [vmem:[%s2777_s6 + $0x388] sm:$0xff]  ;;  %v1138_v7 = vpack.c.bf16 %v938_v56, %v930_v55  ;;  %v576_v41 = vmax.f32 %v320_v36, 0.0 }
  0x6e   : > { %1814 = vmatpush1.bf16.msra.mxu0 %v818_v1  ;;  %1429 = vmatprep.subr.bf16.mxu1 %v757_v2  ;;  %v942_v62 = vld [vmem:[%s2777_s6 + $0x360] sm:$0xff]  ;;  %v955_v0 = vld [vmem:[%s2777_s6 + $0x3c8] sm:$0xff]  ;;  %v825_v1 = vpack.c.bf16 %v689_v50, %v687_v46  ;;  %v765_v46 = vpack.c.bf16 %v569_v35, %v567_v34 }
  0x6f   : > { %1815 = vmatprep.subr.bf16.mxu0 %v821_v16  ;;  %v307_v2 = vld [vmem:[%s3702_s1 + $0x388] sm:$0xff]  ;;  %v308_v16 = vld [vmem:[%s3702_s1 + $0x390] sm:$0xff]  ;;  %v1142_v24 = vpack.c.bf16 %v942_v62, %v934_v61  ;;  %v1147_v25 = vpack.c.bf16 %v955_v0, %v947_v63  ;;  %v442_v11 = vld [vmem:[%s3702_s1 + $0x7c0] sm:$0xff] }
  0x70   : > { %v563_v6 = vmax.f32 %v307_v2, 0.0  ;;  %v564_v21 = vmax.f32 %v308_v16, 0.0  ;;  %v967_v52 = vld [vmem:[%s2777_s6 + $0x428] sm:$0xff]  ;;  %v970_v14 = vld [vmem:[%s2777_s6 + $0x440] sm:$0xff]  ;;  %v698_v15 = vmax.f32 %v442_v11, 0.0  ;;  %v700_v16 = vmax.f32 %v444_v12, 0.0 }
  0x71   : > { %1430 = vmatpush1.bf16.msra.mxu1 %v756_v28  ;;  %v975_v53 = vld [vmem:[%s2777_s6 + $0x468] sm:$0xff]  ;;  %v974_v18 = vld [vmem:[%s2777_s6 + $0x460] sm:$0xff] }
  0x72   : > { %1816 = vmatpush1.bf16.msra.mxu0 %v820_v31  ;;  %1431 = vmatprep.subr.bf16.mxu1 %v759_v32  ;;  %v763_v20 = vpack.c.bf16 %v565_v9, %v563_v6  ;;  %v762_v28 = vpack.c.bf16 %v564_v21, %v562_v17  ;;  %v3326_v31 = vld [vmem:[%s2777_s6 + $0x380] sm:$0xff]  ;;  %v443_v63 = vld [vmem:[%s3702_s1 + $0x7c8] sm:$0xff]  ;;  %v1159_v2 = vpack.c.bf16 %v975_v53, %v967_v52  ;;  %v316_v6 = vld [vmem:[%s3702_s1 + $0x3d0] sm:$0xff]  ;;  %v570_v9 = vmax.f32 %v314_v5, 0.0 }
  0x73   : > { %1301 = vmatmul.mubr.bf16.gmra.mrb[20].mxu1 %v1130_v37  ;;  %1817 = vmatprep.subr.bf16.mxu0 %v823_v38  ;;  %v954_v32 = vld [vmem:[%s2777_s6 + $0x3c0] sm:$0xff]  ;;  %v441_v37 = vld [vmem:[%s3702_s1 + $0x7b8] sm:$0xff]  ;;  %v699_v4 = vmax.f32 %v443_v63, 0.0  ;;  %v572_v10 = vmax.f32 %v316_v6, 0.0  ;;  %v979_v19 = vld [vmem:[%s2777_s6 + $0x488] sm:$0xff] }
  0x74   : > { %1687 = vmatmul.mubr.bf16.gmra.mrb[20].mxu0 %v1134_v42  ;;  %1310 = vmatprep.mubr.bf16.mxu1 %v1139_v43  ;;  %v950_v38 = vld [vmem:[%s2777_s6 + $0x3a0] sm:$0xff]  ;;  %v697_v40 = vmax.f32 %v441_v37, 0.0  ;;  %v312_v42 = vld [vmem:[%s3702_s1 + $0x3b0] sm:$0xff]  ;;  %v1146_v59 = vpack.c.bf16 %v954_v32, %v3326_v31  ;;  %v319_v23 = vld [vmem:[%s3702_s1 + $0x3e8] sm:$0xff] }
  0x75   : > { %1696 = vmatprep.mubr.bf16.mxu0 %v1143_v44  ;;  %1432 = vmatpush1.bf16.msra.mxu1 %v758_v49  ;;  %v438_v43 = vld [vmem:[%s3702_s1 + $0x7a0] sm:$0xff]  ;;  %v568_v48 = vmax.f32 %v312_v42, 0.0  ;;  %v440_v49 = vld [vmem:[%s3702_s1 + $0x7b0] sm:$0xff]  ;;  %v766_v22 = vpack.c.bf16 %v572_v10, %v570_v9  ;;  %v447_v30 = vld [vmem:[%s3702_s1 + $0x7e8] sm:$0xff] }
  0x76   : > { %1818 = vmatpush1.bf16.msra.mxu0 %v822_v57  ;;  %1433 = vmatprep.subr.bf16.mxu1 %v761_v58  ;;  %v958_v44 = vld [vmem:[%s2777_s6 + $0x3e0] sm:$0xff]  ;;  %v694_v50 = vmax.f32 %v438_v43, 0.0  ;;  %v829_v54 = vpack.c.bf16 %v697_v40, %v695_v39  ;;  %v696_v55 = vmax.f32 %v440_v49, 0.0  ;;  %v315_v57 = vld [vmem:[%s3702_s1 + $0x3c8] sm:$0xff]  ;;  %v317_v58 = vld [vmem:[%s3702_s1 + $0x3d8] sm:$0xff]  ;;  %v703_v34 = vmax.f32 %v447_v30, 0.0 }
  0x77   : > { %1819 = vmatprep.subr.bf16.mxu0 %v825_v1  ;;  %v764_v56 = vpack.c.bf16 %v568_v48, %v566_v47  ;;  %v571_v61 = vmax.f32 %v315_v57, 0.0  ;;  %v573_v62 = vmax.f32 %v317_v58, 0.0  ;;  %v1150_v0 = vpack.c.bf16 %v958_v44, %v950_v38  ;;  %v966_v17 = vld [vmem:[%s2777_s6 + $0x420] sm:$0xff]  ;;  %v449_v31 = vld [vmem:[%s3702_s1 + $0x7f8] sm:$0xff]  ;;  %v448_v39 = vld [vmem:[%s3702_s1 + $0x7f0] sm:$0xff] }
  0x78   : > { %v828_v60 = vpack.c.bf16 %v696_v55, %v694_v50  ;;  %v1155_v1 = vpack.c.bf16 %v971_v51, %v963_v45  ;;  %v318_v32 = vld [vmem:[%s3702_s1 + $0x3e0] sm:$0xff]  ;;  %v705_v35 = vmax.f32 %v449_v31, 0.0  ;;  %v704_v43 = vmax.f32 %v448_v39, 0.0  ;;  %v1003_v55 = vld [vmem:[%s2777_s6 + $0x548] sm:$0xff] }
  0x79   : > { %1434 = vmatpush1.bf16.msra.mxu1 %v760_v8  ;;  %v701_v8 = vmax.f32 %v445_v3, 0.0  ;;  %v574_v37 = vmax.f32 %v318_v32, 0.0  ;;  %v446_v38 = vld [vmem:[%s3702_s1 + $0x7e0] sm:$0xff]  ;;  %v1158_v44 = vpack.c.bf16 %v974_v18, %v966_v17  ;;  %v1007_v57 = vld [vmem:[%s2777_s6 + $0x568] sm:$0xff] }
  0x7a   : > { %1820 = vmatpush1.bf16.msra.mxu0 %v824_v13  ;;  %1435 = vmatprep.subr.bf16.mxu1 %v763_v20  ;;  %v962_v13 = vld [vmem:[%s2777_s6 + $0x400] sm:$0xff]  ;;  %v987_v20 = vld [vmem:[%s2777_s6 + $0x4c8] sm:$0xff]  ;;  %v702_v42 = vmax.f32 %v446_v38, 0.0 }
  0x7b   : > { %1311 = vmatmul.mubr.bf16.gmra.mrb[24].mxu1 %v1138_v7  ;;  %1821 = vmatprep.subr.bf16.mxu0 %v827_v26  ;;  %v767_v7 = vpack.c.bf16 %v573_v62, %v571_v61  ;;  %v831_v21 = vpack.c.bf16 %v701_v8, %v699_v4  ;;  %v830_v26 = vpack.c.bf16 %v700_v16, %v698_v15  ;;  %v978_v50 = vld [vmem:[%s2777_s6 + $0x480] sm:$0xff]  ;;  %v1019_v3 = vld [vmem:[%s2777_s6 + $0x5c8] sm:$0xff] }
  0x7c   : > { %1697 = vmatmul.mubr.bf16.gmra.mrb[24].mxu0 %v1142_v24  ;;  %1320 = vmatprep.mubr.bf16.mxu1 %v1147_v25  ;;  %v983_v24 = vld [vmem:[%s2777_s6 + $0x4a8] sm:$0xff]  ;;  %v1163_v45 = vpack.c.bf16 %v987_v20, %v979_v19  ;;  %v768_v48 = vpack.c.bf16 %v576_v41, %v574_v37  ;;  %v832_v49 = vpack.c.bf16 %v704_v43, %v702_v42  ;;  %v986_v51 = vld [vmem:[%s2777_s6 + $0x4c0] sm:$0xff] }
  0x7d   : > { %1706 = vmatprep.mubr.bf16.mxu0 %v1151_v27  ;;  %1436 = vmatpush1.bf16.msra.mxu1 %v762_v28  ;;  %v991_v25 = vld [vmem:[%s2777_s6 + $0x4e8] sm:$0xff]  ;;  %v321_v27 = vld [vmem:[%s3702_s1 + $0x3f8] sm:$0xff]  ;;  %v575_v28 = vmax.f32 %v319_v23, 0.0  ;;  %v982_v52 = vld [vmem:[%s2777_s6 + $0x4a0] sm:$0xff]  ;;  %v1162_v58 = vpack.c.bf16 %v986_v51, %v978_v50 }
  0x7e   : > { %1822 = vmatpush1.bf16.msra.mxu0 %v826_v33  ;;  %1437 = vmatprep.subr.bf16.mxu1 %v765_v46  ;;  %v577_v29 = vmax.f32 %v321_v27, 0.0  ;;  %v1154_v33 = vpack.c.bf16 %v970_v14, %v962_v13  ;;  %v833_v46 = vpack.c.bf16 %v705_v35, %v703_v34  ;;  %v1167_v47 = vpack.c.bf16 %v991_v25, %v983_v24  ;;  %v990_v53 = vld [vmem:[%s2777_s6 + $0x4e0] sm:$0xff]  ;;  %v1015_v4 = vld [vmem:[%s2777_s6 + $0x5a8] sm:$0xff] }
  0x7f   : > { %1823 = vmatprep.subr.bf16.mxu0 %v829_v54  ;;  %v995_v54 = vld [vmem:[%s2777_s6 + $0x508] sm:$0xff]  ;;  %v994_v62 = vld [vmem:[%s2777_s6 + $0x500] sm:$0xff] }
  0x80   : > { %v769_v40 = vpack.c.bf16 %v577_v29, %v575_v28  ;;  %v1002_v63 = vld [vmem:[%s2777_s6 + $0x540] sm:$0xff]  ;;  %v1023_v5 = vld [vmem:[%s2777_s6 + $0x5e8] sm:$0xff] }
  0x81   : > { %1438 = vmatpush1.bf16.msra.mxu1 %v764_v56  ;;  %v999_v56 = vld [vmem:[%s2777_s6 + $0x528] sm:$0xff]  ;;  %v1170_v6 = vpack.c.bf16 %v1002_v63, %v994_v62  ;;  %v1183_v9 = vpack.c.bf16 %v1023_v5, %v1015_v4  ;;  %v1010_v10 = vld [vmem:[%s2777_s6 + $0x580] sm:$0xff]  ;;  %v837_v62 = vld [vmem:[%s2777_s6 + $0x18] sm:$0xff] }
  0x82   : > { %1824 = vmatpush1.bf16.msra.mxu0 %v828_v60  ;;  %1439 = vmatprep.subr.bf16.mxu1 %v767_v7  ;;  %v1171_v60 = vpack.c.bf16 %v1003_v55, %v995_v54  ;;  %v1175_v61 = vpack.c.bf16 %v1007_v57, %v999_v56  ;;  %v1018_v11 = vld [vmem:[%s2777_s6 + $0x5c0] sm:$0xff]  ;;  %v1027_v14 = vld [vmem:[%s2777_s6 + $0x608] sm:$0xff]  ;;  %v845_v63 = vld [vmem:[%s2777_s6 + $0x58] sm:$0xff] }
  0x83   : > { %1321 = vmatmul.mubr.bf16.gmra.mrb[28].mxu1 %v1146_v59  ;;  %1825 = vmatprep.subr.bf16.mxu0 %v831_v21  ;;  %v1166_v59 = vpack.c.bf16 %v990_v53, %v982_v52  ;;  %v1014_v12 = vld [vmem:[%s2777_s6 + $0x5a0] sm:$0xff]  ;;  %v1035_v15 = vld [vmem:[%s2777_s6 + $0x648] sm:$0xff]  ;;  %v1178_v18 = vpack.c.bf16 %v1018_v11, %v1010_v10  ;;  %v1093_v4 = vpack.c.bf16 %v845_v63, %v837_v62  ;;  %v853_v10 = vld [vmem:[%s2777_s6 + $0x98] sm:$0xff] }
  0x84   : > { %1707 = vmatmul.mubr.bf16.gmra.mrb[28].mxu0 %v1150_v0  ;;  %1330 = vmatprep.mubr.bf16.mxu1 %v1155_v1  ;;  %v998_v0 = vld [vmem:[%s2777_s6 + $0x520] sm:$0xff]  ;;  %v1031_v16 = vld [vmem:[%s2777_s6 + $0x628] sm:$0xff]  ;;  %v1187_v20 = vpack.c.bf16 %v1035_v15, %v1027_v14  ;;  %v861_v11 = vld [vmem:[%s2777_s6 + $0xd8] sm:$0xff] }
  0x85   : > { %1716 = vmatprep.mubr.bf16.mxu0 %v1159_v2  ;;  %1440 = vmatpush1.bf16.msra.mxu1 %v766_v22  ;;  %v1006_v1 = vld [vmem:[%s2777_s6 + $0x560] sm:$0xff]  ;;  %v1011_v2 = vld [vmem:[%s2777_s6 + $0x588] sm:$0xff] }
  0x86   : > { %1826 = vmatpush1.bf16.msra.mxu0 %v830_v26  ;;  %1441 = vmatprep.subr.bf16.mxu1 %v769_v40  ;;  %v1174_v7 = vpack.c.bf16 %v1006_v1, %v998_v0  ;;  %v1179_v8 = vpack.c.bf16 %v1019_v3, %v1011_v2  ;;  %v1022_v13 = vld [vmem:[%s2777_s6 + $0x5e0] sm:$0xff]  ;;  %v1039_v17 = vld [vmem:[%s2777_s6 + $0x668] sm:$0xff]  ;;  %v841_v0 = vld [vmem:[%s2777_s6 + $0x38] sm:$0xff] }
  0x87   : > { %1827 = vmatprep.subr.bf16.mxu0 %v833_v46  ;;  %v1182_v19 = vpack.c.bf16 %v1022_v13, %v1014_v12  ;;  %v1191_v21 = vpack.c.bf16 %v1039_v17, %v1031_v16  ;;  %v1026_v22 = vld [vmem:[%s2777_s6 + $0x600] sm:$0xff]  ;;  %v1043_v26 = vld [vmem:[%s2777_s6 + $0x688] sm:$0xff]  ;;  %v849_v1 = vld [vmem:[%s2777_s6 + $0x78] sm:$0xff]  ;;  %v1101_v16 = vpack.c.bf16 %v861_v11, %v853_v10 }
  0x88   : > { %v1034_v23 = vld [vmem:[%s2777_s6 + $0x640] sm:$0xff]  ;;  %v1051_v27 = vld [vmem:[%s2777_s6 + $0x6c8] sm:$0xff]  ;;  %v1097_v5 = vpack.c.bf16 %v849_v1, %v841_v0  ;;  %v857_v12 = vld [vmem:[%s2777_s6 + $0xb8] sm:$0xff] }
  0x89   : > { %1442 = vmatpush1.bf16.msra.mxu1 %v768_v48  ;;  %v1030_v24 = vld [vmem:[%s2777_s6 + $0x620] sm:$0xff]  ;;  %v1047_v28 = vld [vmem:[%s2777_s6 + $0x6a8] sm:$0xff]  ;;  %v1186_v30 = vpack.c.bf16 %v1034_v23, %v1026_v22  ;;  %v1195_v32 = vpack.c.bf16 %v1051_v27, %v1043_v26  ;;  %v865_v13 = vld [vmem:[%s2777_s6 + $0xf8] sm:$0xff] }
  0x8a   : > { %1828 = vmatpush1.bf16.msra.mxu0 %v832_v49  ;;  %v1038_v25 = vld [vmem:[%s2777_s6 + $0x660] sm:$0xff]  ;;  %v1055_v29 = vld [vmem:[%s2777_s6 + $0x6e8] sm:$0xff]  ;;  %v1105_v17 = vpack.c.bf16 %v865_v13, %v857_v12  ;;  %v869_v22 = vld [vmem:[%s2777_s6 + $0x118] sm:$0xff] }
  0x8b   : > { %1331 = vmatmul.mubr.bf16.gmra.mrb[32].mxu1 %v1154_v33  ;;  %v1190_v31 = vpack.c.bf16 %v1038_v25, %v1030_v24  ;;  %v1199_v33 = vpack.c.bf16 %v1055_v29, %v1047_v28  ;;  %v1042_v34 = vld [vmem:[%s2777_s6 + $0x680] sm:$0xff]  ;;  %v1059_v38 = vld [vmem:[%s2777_s6 + $0x708] sm:$0xff]  ;;  %v877_v23 = vld [vmem:[%s2777_s6 + $0x158] sm:$0xff] }
  0x8c   : > { %1717 = vmatmul.mubr.bf16.gmra.mrb[32].mxu0 %v1158_v44  ;;  %1340 = vmatprep.mubr.bf16.mxu1 %v1163_v45  ;;  %v1050_v35 = vld [vmem:[%s2777_s6 + $0x6c0] sm:$0xff]  ;;  %v1067_v39 = vld [vmem:[%s2777_s6 + $0x748] sm:$0xff]  ;;  %v873_v24 = vld [vmem:[%s2777_s6 + $0x138] sm:$0xff]  ;;  %v1109_v28 = vpack.c.bf16 %v877_v23, %v869_v22 }
  0x8d   : > { %1726 = vmatprep.mubr.bf16.mxu0 %v1167_v47  ;;  %v1046_v36 = vld [vmem:[%s2777_s6 + $0x6a0] sm:$0xff]  ;;  %v1063_v40 = vld [vmem:[%s2777_s6 + $0x728] sm:$0xff]  ;;  %v1194_v42 = vpack.c.bf16 %v1050_v35, %v1042_v34  ;;  %v1203_v44 = vpack.c.bf16 %v1067_v39, %v1059_v38  ;;  %v881_v25 = vld [vmem:[%s2777_s6 + $0x178] sm:$0xff] }
  0x8e   : > { %v1054_v37 = vld [vmem:[%s2777_s6 + $0x6e0] sm:$0xff]  ;;  %v1071_v41 = vld [vmem:[%s2777_s6 + $0x768] sm:$0xff]  ;;  %v1113_v29 = vpack.c.bf16 %v881_v25, %v873_v24  ;;  %v885_v34 = vld [vmem:[%s2777_s6 + $0x198] sm:$0xff] }
  0x8f   : > { %v1198_v43 = vpack.c.bf16 %v1054_v37, %v1046_v36  ;;  %v1207_v45 = vpack.c.bf16 %v1071_v41, %v1063_v40  ;;  %v1058_v46 = vld [vmem:[%s2777_s6 + $0x700] sm:$0xff]  ;;  %v1075_v50 = vld [vmem:[%s2777_s6 + $0x788] sm:$0xff]  ;;  %v893_v35 = vld [vmem:[%s2777_s6 + $0x1d8] sm:$0xff] }
  0x90   : > { %v1066_v47 = vld [vmem:[%s2777_s6 + $0x740] sm:$0xff]  ;;  %v1083_v51 = vld [vmem:[%s2777_s6 + $0x7c8] sm:$0xff]  ;;  %v889_v36 = vld [vmem:[%s2777_s6 + $0x1b8] sm:$0xff]  ;;  %v1117_v40 = vpack.c.bf16 %v893_v35, %v885_v34 }
  0x91   : > { %v1062_v48 = vld [vmem:[%s2777_s6 + $0x720] sm:$0xff]  ;;  %v1079_v52 = vld [vmem:[%s2777_s6 + $0x7a8] sm:$0xff]  ;;  %v1202_v54 = vpack.c.bf16 %v1066_v47, %v1058_v46  ;;  %v1211_v56 = vpack.c.bf16 %v1083_v51, %v1075_v50  ;;  %v897_v37 = vld [vmem:[%s2777_s6 + $0x1f8] sm:$0xff] }
  0x92   : > { %v1070_v49 = vld [vmem:[%s2777_s6 + $0x760] sm:$0xff]  ;;  %v1087_v53 = vld [vmem:[%s2777_s6 + $0x7e8] sm:$0xff]  ;;  %v1121_v41 = vpack.c.bf16 %v897_v37, %v889_v36  ;;  %v901_v46 = vld [vmem:[%s2777_s6 + $0x218] sm:$0xff] }
  0x93   : > { %1341 = vmatmul.mubr.bf16.gmra.mrb[36].mxu1 %v1162_v58  ;;  %v1206_v55 = vpack.c.bf16 %v1070_v49, %v1062_v48  ;;  %v1215_v57 = vpack.c.bf16 %v1087_v53, %v1079_v52  ;;  %v1074_v58 = vld [vmem:[%s2777_s6 + $0x780] sm:$0xff]  ;;  %v909_v47 = vld [vmem:[%s2777_s6 + $0x258] sm:$0xff] }
  0x94   : > { %1727 = vmatmul.mubr.bf16.gmra.mrb[36].mxu0 %v1166_v59  ;;  %1350 = vmatprep.mubr.bf16.mxu1 %v1171_v60  ;;  %v1082_v59 = vld [vmem:[%s2777_s6 + $0x7c0] sm:$0xff]  ;;  %v905_v48 = vld [vmem:[%s2777_s6 + $0x238] sm:$0xff]  ;;  %v1125_v52 = vpack.c.bf16 %v909_v47, %v901_v46 }
  0x95   : > { %1736 = vmatprep.mubr.bf16.mxu0 %v1175_v61  ;;  %v1078_v60 = vld [vmem:[%s2777_s6 + $0x7a0] sm:$0xff]  ;;  %v1210_v2 = vpack.c.bf16 %v1082_v59, %v1074_v58  ;;  %v913_v49 = vld [vmem:[%s2777_s6 + $0x278] sm:$0xff] }
  0x96   : > { %v1086_v61 = vld [vmem:[%s2777_s6 + $0x7e0] sm:$0xff]  ;;  %v1129_v53 = vpack.c.bf16 %v913_v49, %v905_v48  ;;  %v917_v58 = vld [vmem:[%s2777_s6 + $0x298] sm:$0xff] }
  0x97   : > { %v1214_v3 = vpack.c.bf16 %v1086_v61, %v1078_v60  ;;  %v925_v59 = vld [vmem:[%s2777_s6 + $0x2d8] sm:$0xff] }
  0x98   : > { %v921_v60 = vld [vmem:[%s2777_s6 + $0x2b8] sm:$0xff]  ;;  %v1133_v0 = vpack.c.bf16 %v925_v59, %v917_v58 }
  0x99   : > { %v929_v61 = vld [vmem:[%s2777_s6 + $0x2f8] sm:$0xff] }
  0x9a   : > { %v1137_v1 = vpack.c.bf16 %v929_v61, %v921_v60 }
  0x9b   : > { %1351 = vmatmul.mubr.bf16.gmra.mrb[40].mxu1 %v1170_v6  ;;  %v836_v6 = vld [vmem:[%s2777_s6 + $0x10] sm:$0xff] }
  0x9c   : > { %1737 = vmatmul.mubr.bf16.gmra.mrb[40].mxu0 %v1174_v7  ;;  %1360 = vmatprep.mubr.bf16.mxu1 %v1179_v8  ;;  %v844_v7 = vld [vmem:[%s2777_s6 + $0x50] sm:$0xff] }
  0x9d   : > { %1746 = vmatprep.mubr.bf16.mxu0 %v1183_v9  ;;  %v840_v8 = vld [vmem:[%s2777_s6 + $0x30] sm:$0xff]  ;;  %v1092_v14 = vpack.c.bf16 %v844_v7, %v836_v6  ;;  %v933_v6 = vld [vmem:[%s2777_s6 + $0x318] sm:$0xff] }
  0x9e   : > { %v848_v9 = vld [vmem:[%s2777_s6 + $0x70] sm:$0xff]  ;;  %v941_v7 = vld [vmem:[%s2777_s6 + $0x358] sm:$0xff] }
  0x9f   : > { %v1096_v15 = vpack.c.bf16 %v848_v9, %v840_v8  ;;  %v937_v8 = vld [vmem:[%s2777_s6 + $0x338] sm:$0xff]  ;;  %v1141_v12 = vpack.c.bf16 %v941_v7, %v933_v6 }
  0xa0   : > { %v945_v9 = vld [vmem:[%s2777_s6 + $0x378] sm:$0xff] }
  0xa1   : > { %v1145_v13 = vpack.c.bf16 %v945_v9, %v937_v8 }
  0xa3   : > { %1361 = vmatmul.mubr.bf16.gmra.mrb[44].mxu1 %v1178_v18  ;;  %v852_v18 = vld [vmem:[%s2777_s6 + $0x90] sm:$0xff] }
  0xa4   : > { %1747 = vmatmul.mubr.bf16.gmra.mrb[44].mxu0 %v1182_v19  ;;  %1370 = vmatprep.mubr.bf16.mxu1 %v1187_v20  ;;  %v860_v19 = vld [vmem:[%s2777_s6 + $0xd0] sm:$0xff] }
  0xa5   : > { %1756 = vmatprep.mubr.bf16.mxu0 %v1191_v21  ;;  %v856_v20 = vld [vmem:[%s2777_s6 + $0xb0] sm:$0xff]  ;;  %v1100_v26 = vpack.c.bf16 %v860_v19, %v852_v18  ;;  %v949_v18 = vld [vmem:[%s2777_s6 + $0x398] sm:$0xff] }
  0xa6   : > { %v864_v21 = vld [vmem:[%s2777_s6 + $0xf0] sm:$0xff]  ;;  %v957_v19 = vld [vmem:[%s2777_s6 + $0x3d8] sm:$0xff] }
  0xa7   : > { %v1104_v27 = vpack.c.bf16 %v864_v21, %v856_v20  ;;  %v953_v20 = vld [vmem:[%s2777_s6 + $0x3b8] sm:$0xff]  ;;  %v1149_v24 = vpack.c.bf16 %v957_v19, %v949_v18 }
  0xa8   : > { %v961_v21 = vld [vmem:[%s2777_s6 + $0x3f8] sm:$0xff] }
  0xa9   : > { %v1153_v25 = vpack.c.bf16 %v961_v21, %v953_v20 }
  0xab   : > { %1371 = vmatmul.mubr.bf16.gmra.mrb[48].mxu1 %v1186_v30  ;;  %v868_v30 = vld [vmem:[%s2777_s6 + $0x110] sm:$0xff] }
  0xac   : > { %1757 = vmatmul.mubr.bf16.gmra.mrb[48].mxu0 %v1190_v31  ;;  %1380 = vmatprep.mubr.bf16.mxu1 %v1195_v32  ;;  %v876_v31 = vld [vmem:[%s2777_s6 + $0x150] sm:$0xff] }
  0xad   : > { %1766 = vmatprep.mubr.bf16.mxu0 %v1199_v33  ;;  %v872_v32 = vld [vmem:[%s2777_s6 + $0x130] sm:$0xff]  ;;  %v1108_v38 = vpack.c.bf16 %v876_v31, %v868_v30  ;;  %v965_v30 = vld [vmem:[%s2777_s6 + $0x418] sm:$0xff] }
  0xae   : > { %v880_v33 = vld [vmem:[%s2777_s6 + $0x170] sm:$0xff]  ;;  %v973_v31 = vld [vmem:[%s2777_s6 + $0x458] sm:$0xff] }
  0xaf   : > { %v1112_v39 = vpack.c.bf16 %v880_v33, %v872_v32  ;;  %v969_v32 = vld [vmem:[%s2777_s6 + $0x438] sm:$0xff]  ;;  %v1157_v36 = vpack.c.bf16 %v973_v31, %v965_v30 }
  0xb0   : > { %v977_v33 = vld [vmem:[%s2777_s6 + $0x478] sm:$0xff] }
  0xb1   : > { %v1161_v37 = vpack.c.bf16 %v977_v33, %v969_v32 }
  0xb3   : > { %1381 = vmatmul.mubr.bf16.gmra.mrb[52].mxu1 %v1194_v42  ;;  %v884_v42 = vld [vmem:[%s2777_s6 + $0x190] sm:$0xff] }
  0xb4   : > { %1767 = vmatmul.mubr.bf16.gmra.mrb[52].mxu0 %v1198_v43  ;;  %1390 = vmatprep.mubr.bf16.mxu1 %v1203_v44  ;;  %v892_v43 = vld [vmem:[%s2777_s6 + $0x1d0] sm:$0xff] }
  0xb5   : > { %1776 = vmatprep.mubr.bf16.mxu0 %v1207_v45  ;;  %v888_v44 = vld [vmem:[%s2777_s6 + $0x1b0] sm:$0xff]  ;;  %v1116_v50 = vpack.c.bf16 %v892_v43, %v884_v42  ;;  %v981_v42 = vld [vmem:[%s2777_s6 + $0x498] sm:$0xff] }
  0xb6   : > { %v896_v45 = vld [vmem:[%s2777_s6 + $0x1f0] sm:$0xff]  ;;  %v989_v43 = vld [vmem:[%s2777_s6 + $0x4d8] sm:$0xff] }
  0xb7   : > { %v1120_v51 = vpack.c.bf16 %v896_v45, %v888_v44  ;;  %v985_v44 = vld [vmem:[%s2777_s6 + $0x4b8] sm:$0xff]  ;;  %v1165_v48 = vpack.c.bf16 %v989_v43, %v981_v42 }
  0xb8   : > { %v993_v45 = vld [vmem:[%s2777_s6 + $0x4f8] sm:$0xff] }
  0xb9   : > { %v1169_v49 = vpack.c.bf16 %v993_v45, %v985_v44 }
  0xbb   : > { %1391 = vmatmul.mubr.bf16.gmra.mrb[56].mxu1 %v1202_v54  ;;  %v900_v54 = vld [vmem:[%s2777_s6 + $0x210] sm:$0xff] }
  0xbc   : > { %1777 = vmatmul.mubr.bf16.gmra.mrb[56].mxu0 %v1206_v55  ;;  %1400 = vmatprep.mubr.bf16.mxu1 %v1211_v56  ;;  %v908_v55 = vld [vmem:[%s2777_s6 + $0x250] sm:$0xff] }
  0xbd   : > { %1786 = vmatprep.mubr.bf16.mxu0 %v1215_v57  ;;  %v904_v56 = vld [vmem:[%s2777_s6 + $0x230] sm:$0xff]  ;;  %v1124_v62 = vpack.c.bf16 %v908_v55, %v900_v54  ;;  %v997_v54 = vld [vmem:[%s2777_s6 + $0x518] sm:$0xff] }
  0xbe   : > { %v912_v57 = vld [vmem:[%s2777_s6 + $0x270] sm:$0xff]  ;;  %v1005_v55 = vld [vmem:[%s2777_s6 + $0x558] sm:$0xff] }
  0xbf   : > { %v1128_v63 = vpack.c.bf16 %v912_v57, %v904_v56  ;;  %v1001_v56 = vld [vmem:[%s2777_s6 + $0x538] sm:$0xff]  ;;  %v1173_v60 = vpack.c.bf16 %v1005_v55, %v997_v54 }
  0xc0   : > { %v1009_v57 = vld [vmem:[%s2777_s6 + $0x578] sm:$0xff] }
  0xc1   : > { %v1177_v61 = vpack.c.bf16 %v1009_v57, %v1001_v56 }
  0xc3   : > { %1401 = vmatmul.mubr.bf16.gmra.mrb[60].mxu1 %v1210_v2  ;;  %v916_v2 = vld [vmem:[%s2777_s6 + $0x290] sm:$0xff] }
  0xc4   : > { %1787 = vmatmul.mubr.bf16.gmra.mrb[60].mxu0 %v1214_v3  ;;  %1443 = vmatprep.mubr.bf16.mxu1 %v1093_v4  ;;  %v924_v3 = vld [vmem:[%s2777_s6 + $0x2d0] sm:$0xff] }
  0xc5   : > { %1829 = vmatprep.mubr.bf16.mxu0 %v1097_v5  ;;  %v920_v4 = vld [vmem:[%s2777_s6 + $0x2b0] sm:$0xff]  ;;  %v1132_v10 = vpack.c.bf16 %v924_v3, %v916_v2  ;;  %v1013_v2 = vld [vmem:[%s2777_s6 + $0x598] sm:$0xff] }
  0xc6   : > { %v928_v5 = vld [vmem:[%s2777_s6 + $0x2f0] sm:$0xff]  ;;  %v1021_v3 = vld [vmem:[%s2777_s6 + $0x5d8] sm:$0xff] }
  0xc7   : > { %v1136_v11 = vpack.c.bf16 %v928_v5, %v920_v4  ;;  %v1017_v4 = vld [vmem:[%s2777_s6 + $0x5b8] sm:$0xff]  ;;  %v1181_v8 = vpack.c.bf16 %v1021_v3, %v1013_v2 }
  0xc8   : > { %v1025_v5 = vld [vmem:[%s2777_s6 + $0x5f8] sm:$0xff] }
  0xc9   : > { %v1185_v9 = vpack.c.bf16 %v1025_v5, %v1017_v4 }
  0xcb   : > { %1444 = vmatmul.mubr.bf16.vlgmr.msra.gmra.mrb[0].mxu1 %v1092_v14  ;;  %v932_v14 = vld [vmem:[%s2777_s6 + $0x310] sm:$0xff] }
  0xcc   : > { %1830 = vmatmul.mubr.bf16.vlgmr.msra.gmra.mrb[0].mxu0 %v1096_v15  ;;  %1453 = vmatprep.mubr.bf16.mxu1 %v1101_v16  ;;  %v940_v15 = vld [vmem:[%s2777_s6 + $0x350] sm:$0xff] }
  0xcd   : > { %1839 = vmatprep.mubr.bf16.mxu0 %v1105_v17  ;;  %v936_v16 = vld [vmem:[%s2777_s6 + $0x330] sm:$0xff]  ;;  %v1140_v22 = vpack.c.bf16 %v940_v15, %v932_v14  ;;  %v1029_v14 = vld [vmem:[%s2777_s6 + $0x618] sm:$0xff] }
  0xce   : > { %v944_v17 = vld [vmem:[%s2777_s6 + $0x370] sm:$0xff]  ;;  %v1037_v15 = vld [vmem:[%s2777_s6 + $0x658] sm:$0xff] }
  0xcf   : > { %v1144_v23 = vpack.c.bf16 %v944_v17, %v936_v16  ;;  %v1033_v16 = vld [vmem:[%s2777_s6 + $0x638] sm:$0xff]  ;;  %v1189_v20 = vpack.c.bf16 %v1037_v15, %v1029_v14 }
  0xd0   : > { %v1041_v17 = vld [vmem:[%s2777_s6 + $0x678] sm:$0xff] }
  0xd1   : > { %v1193_v21 = vpack.c.bf16 %v1041_v17, %v1033_v16 }
  0xd3   : > { %1454 = vmatmul.mubr.bf16.gmra.mrb[4].mxu1 %v1100_v26  ;;  %v948_v26 = vld [vmem:[%s2777_s6 + $0x390] sm:$0xff] }
  0xd4   : > { %1840 = vmatmul.mubr.bf16.gmra.mrb[4].mxu0 %v1104_v27  ;;  %1463 = vmatprep.mubr.bf16.mxu1 %v1109_v28  ;;  %v956_v27 = vld [vmem:[%s2777_s6 + $0x3d0] sm:$0xff] }
  0xd5   : > { %1849 = vmatprep.mubr.bf16.mxu0 %v1113_v29  ;;  %v952_v28 = vld [vmem:[%s2777_s6 + $0x3b0] sm:$0xff]  ;;  %v1148_v34 = vpack.c.bf16 %v956_v27, %v948_v26  ;;  %v1045_v26 = vld [vmem:[%s2777_s6 + $0x698] sm:$0xff] }
  0xd6   : > { %v960_v29 = vld [vmem:[%s2777_s6 + $0x3f0] sm:$0xff]  ;;  %v1053_v27 = vld [vmem:[%s2777_s6 + $0x6d8] sm:$0xff] }
  0xd7   : > { %v1152_v35 = vpack.c.bf16 %v960_v29, %v952_v28  ;;  %v1049_v28 = vld [vmem:[%s2777_s6 + $0x6b8] sm:$0xff]  ;;  %v1197_v32 = vpack.c.bf16 %v1053_v27, %v1045_v26 }
  0xd8   : > { %v1057_v29 = vld [vmem:[%s2777_s6 + $0x6f8] sm:$0xff] }
  0xd9   : > { %v1201_v33 = vpack.c.bf16 %v1057_v29, %v1049_v28 }
  0xdb   : > { %1464 = vmatmul.mubr.bf16.gmra.mrb[8].mxu1 %v1108_v38  ;;  %v964_v38 = vld [vmem:[%s2777_s6 + $0x410] sm:$0xff] }
  0xdc   : > { %1850 = vmatmul.mubr.bf16.gmra.mrb[8].mxu0 %v1112_v39  ;;  %1473 = vmatprep.mubr.bf16.mxu1 %v1117_v40  ;;  %v972_v39 = vld [vmem:[%s2777_s6 + $0x450] sm:$0xff] }
  0xdd   : > { %1859 = vmatprep.mubr.bf16.mxu0 %v1121_v41  ;;  %v968_v40 = vld [vmem:[%s2777_s6 + $0x430] sm:$0xff]  ;;  %v1156_v46 = vpack.c.bf16 %v972_v39, %v964_v38  ;;  %v1061_v38 = vld [vmem:[%s2777_s6 + $0x718] sm:$0xff] }
  0xde   : > { %v976_v41 = vld [vmem:[%s2777_s6 + $0x470] sm:$0xff]  ;;  %v1069_v39 = vld [vmem:[%s2777_s6 + $0x758] sm:$0xff] }
  0xdf   : > { %v1160_v47 = vpack.c.bf16 %v976_v41, %v968_v40  ;;  %v1065_v40 = vld [vmem:[%s2777_s6 + $0x738] sm:$0xff]  ;;  %v1205_v44 = vpack.c.bf16 %v1069_v39, %v1061_v38 }
  0xe0   : > { %v1073_v41 = vld [vmem:[%s2777_s6 + $0x778] sm:$0xff] }
  0xe1   : > { %v1209_v45 = vpack.c.bf16 %v1073_v41, %v1065_v40 }
  0xe3   : > { %1474 = vmatmul.mubr.bf16.gmra.mrb[12].mxu1 %v1116_v50  ;;  %v980_v50 = vld [vmem:[%s2777_s6 + $0x490] sm:$0xff] }
  0xe4   : > { %1860 = vmatmul.mubr.bf16.gmra.mrb[12].mxu0 %v1120_v51  ;;  %1483 = vmatprep.mubr.bf16.mxu1 %v1125_v52  ;;  %v988_v51 = vld [vmem:[%s2777_s6 + $0x4d0] sm:$0xff] }
  0xe5   : > { %1869 = vmatprep.mubr.bf16.mxu0 %v1129_v53  ;;  %v984_v52 = vld [vmem:[%s2777_s6 + $0x4b0] sm:$0xff]  ;;  %v1164_v58 = vpack.c.bf16 %v988_v51, %v980_v50  ;;  %v1077_v50 = vld [vmem:[%s2777_s6 + $0x798] sm:$0xff] }
  0xe6   : > { %v992_v53 = vld [vmem:[%s2777_s6 + $0x4f0] sm:$0xff]  ;;  %v1085_v51 = vld [vmem:[%s2777_s6 + $0x7d8] sm:$0xff] }
  0xe7   : > { %v1168_v59 = vpack.c.bf16 %v992_v53, %v984_v52  ;;  %v1081_v52 = vld [vmem:[%s2777_s6 + $0x7b8] sm:$0xff]  ;;  %v1213_v56 = vpack.c.bf16 %v1085_v51, %v1077_v50 }
  0xe8   : > { %v1089_v53 = vld [vmem:[%s2777_s6 + $0x7f8] sm:$0xff] }
  0xe9   : > { %v1217_v57 = vpack.c.bf16 %v1089_v53, %v1081_v52 }
  0xeb   : > { %1484 = vmatmul.mubr.bf16.gmra.mrb[16].mxu1 %v1124_v62  ;;  %v996_v62 = vld [vmem:[%s2777_s6 + $0x510] sm:$0xff] }
  0xec   : > { %1870 = vmatmul.mubr.bf16.gmra.mrb[16].mxu0 %v1128_v63  ;;  %1493 = vmatprep.mubr.bf16.mxu1 %v1133_v0  ;;  %v1004_v63 = vld [vmem:[%s2777_s6 + $0x550] sm:$0xff] }
  0xed   : > { %1879 = vmatprep.mubr.bf16.mxu0 %v1137_v1  ;;  %v1000_v0 = vld [vmem:[%s2777_s6 + $0x530] sm:$0xff]  ;;  %v1172_v6 = vpack.c.bf16 %v1004_v63, %v996_v62 }
  0xee   : > { %v1008_v1 = vld [vmem:[%s2777_s6 + $0x570] sm:$0xff] }
  0xef   : > { %v1176_v7 = vpack.c.bf16 %v1008_v1, %v1000_v0 }
  0xf3   : > { %1494 = vmatmul.mubr.bf16.gmra.mrb[20].mxu1 %v1132_v10  ;;  %v1012_v10 = vld [vmem:[%s2777_s6 + $0x590] sm:$0xff] }
  0xf4   : > { %1880 = vmatmul.mubr.bf16.gmra.mrb[20].mxu0 %v1136_v11  ;;  %1503 = vmatprep.mubr.bf16.mxu1 %v1141_v12  ;;  %v1020_v11 = vld [vmem:[%s2777_s6 + $0x5d0] sm:$0xff] }
  0xf5   : > { %1889 = vmatprep.mubr.bf16.mxu0 %v1145_v13  ;;  %v1016_v12 = vld [vmem:[%s2777_s6 + $0x5b0] sm:$0xff]  ;;  %v1180_v18 = vpack.c.bf16 %v1020_v11, %v1012_v10 }
  0xf6   : > { %v1024_v13 = vld [vmem:[%s2777_s6 + $0x5f0] sm:$0xff] }
  0xf7   : > { %v1184_v19 = vpack.c.bf16 %v1024_v13, %v1016_v12 }
  0xfb   : > { %1504 = vmatmul.mubr.bf16.gmra.mrb[24].mxu1 %v1140_v22  ;;  %v1028_v22 = vld [vmem:[%s2777_s6 + $0x610] sm:$0xff] }
  0xfc   : > { %1890 = vmatmul.mubr.bf16.gmra.mrb[24].mxu0 %v1144_v23  ;;  %1513 = vmatprep.mubr.bf16.mxu1 %v1149_v24  ;;  %v1036_v23 = vld [vmem:[%s2777_s6 + $0x650] sm:$0xff] }
  0xfd   : > { %1899 = vmatprep.mubr.bf16.mxu0 %v1153_v25  ;;  %v1032_v24 = vld [vmem:[%s2777_s6 + $0x630] sm:$0xff]  ;;  %v1188_v30 = vpack.c.bf16 %v1036_v23, %v1028_v22 }
  0xfe   : > { %v1040_v25 = vld [vmem:[%s2777_s6 + $0x670] sm:$0xff] }
  0xff   : > { %v1192_v31 = vpack.c.bf16 %v1040_v25, %v1032_v24 }
 0x103   : > { %1514 = vmatmul.mubr.bf16.gmra.mrb[28].mxu1 %v1148_v34  ;;  %v1044_v34 = vld [vmem:[%s2777_s6 + $0x690] sm:$0xff] }
 0x104   : > { %1900 = vmatmul.mubr.bf16.gmra.mrb[28].mxu0 %v1152_v35  ;;  %1523 = vmatprep.mubr.bf16.mxu1 %v1157_v36  ;;  %v1052_v35 = vld [vmem:[%s2777_s6 + $0x6d0] sm:$0xff] }
 0x105   : > { %1909 = vmatprep.mubr.bf16.mxu0 %v1161_v37  ;;  %v1048_v36 = vld [vmem:[%s2777_s6 + $0x6b0] sm:$0xff]  ;;  %v1196_v42 = vpack.c.bf16 %v1052_v35, %v1044_v34 }
 0x106   : > { %v1056_v37 = vld [vmem:[%s2777_s6 + $0x6f0] sm:$0xff] }
 0x107   : > { %v1200_v43 = vpack.c.bf16 %v1056_v37, %v1048_v36 }
 0x10b   : > { %1524 = vmatmul.mubr.bf16.gmra.mrb[32].mxu1 %v1156_v46  ;;  %v1060_v46 = vld [vmem:[%s2777_s6 + $0x710] sm:$0xff] }
 0x10c   : > { %1910 = vmatmul.mubr.bf16.gmra.mrb[32].mxu0 %v1160_v47  ;;  %1533 = vmatprep.mubr.bf16.mxu1 %v1165_v48  ;;  %v1068_v47 = vld [vmem:[%s2777_s6 + $0x750] sm:$0xff] }
 0x10d   : > { %1919 = vmatprep.mubr.bf16.mxu0 %v1169_v49  ;;  %v1064_v48 = vld [vmem:[%s2777_s6 + $0x730] sm:$0xff]  ;;  %v1204_v54 = vpack.c.bf16 %v1068_v47, %v1060_v46 }
 0x10e   : > { %v1072_v49 = vld [vmem:[%s2777_s6 + $0x770] sm:$0xff] }
 0x10f   : > { %v1208_v55 = vpack.c.bf16 %v1072_v49, %v1064_v48 }
 0x113   : > { %1534 = vmatmul.mubr.bf16.gmra.mrb[36].mxu1 %v1164_v58  ;;  %v1076_v58 = vld [vmem:[%s2777_s6 + $0x790] sm:$0xff] }
 0x114   : > { %1920 = vmatmul.mubr.bf16.gmra.mrb[36].mxu0 %v1168_v59  ;;  %1543 = vmatprep.mubr.bf16.mxu1 %v1173_v60  ;;  %v1084_v59 = vld [vmem:[%s2777_s6 + $0x7d0] sm:$0xff] }
 0x115   : > { %1929 = vmatprep.mubr.bf16.mxu0 %v1177_v61  ;;  %v1080_v60 = vld [vmem:[%s2777_s6 + $0x7b0] sm:$0xff]  ;;  %v1212_v62 = vpack.c.bf16 %v1084_v59, %v1076_v58 }
 0x116   : > { %v1088_v61 = vld [vmem:[%s2777_s6 + $0x7f0] sm:$0xff] }
 0x117   : > { %v1216_v63 = vpack.c.bf16 %v1088_v61, %v1080_v60 }
 0x11b   : > { %1544 = vmatmul.mubr.bf16.gmra.mrb[40].mxu1 %v1172_v6 }
 0x11c   : > { %1930 = vmatmul.mubr.bf16.gmra.mrb[40].mxu0 %v1176_v7  ;;  %1553 = vmatprep.mubr.bf16.mxu1 %v1181_v8 }
 0x11d   : > { %1939 = vmatprep.mubr.bf16.mxu0 %v1185_v9 }
 0x123   : > { %1554 = vmatmul.mubr.bf16.gmra.mrb[44].mxu1 %v1180_v18 }
 0x124   : > { %1940 = vmatmul.mubr.bf16.gmra.mrb[44].mxu0 %v1184_v19  ;;  %1563 = vmatprep.mubr.bf16.mxu1 %v1189_v20 }
 0x125   : > { %1949 = vmatprep.mubr.bf16.mxu0 %v1193_v21 }
 0x12b   : > { %1564 = vmatmul.mubr.bf16.gmra.mrb[48].mxu1 %v1188_v30 }
 0x12c   : > { %1950 = vmatmul.mubr.bf16.gmra.mrb[48].mxu0 %v1192_v31  ;;  %1573 = vmatprep.mubr.bf16.mxu1 %v1197_v32 }
 0x12d   : > { %1959 = vmatprep.mubr.bf16.mxu0 %v1201_v33 }
 0x133   : > { %1574 = vmatmul.mubr.bf16.gmra.mrb[52].mxu1 %v1196_v42 }
 0x134   : > { %1960 = vmatmul.mubr.bf16.gmra.mrb[52].mxu0 %v1200_v43  ;;  %1583 = vmatprep.mubr.bf16.mxu1 %v1205_v44 }
 0x135   : > { %1969 = vmatprep.mubr.bf16.mxu0 %v1209_v45 }
 0x13b   : > { %1584 = vmatmul.mubr.bf16.gmra.mrb[56].mxu1 %v1204_v54 }
 0x13c   : > { %1970 = vmatmul.mubr.bf16.gmra.mrb[56].mxu0 %v1208_v55  ;;  %1593 = vmatprep.mubr.bf16.mxu1 %v1213_v56 }
 0x13d   : > { %1979 = vmatprep.mubr.bf16.mxu0 %v1217_v57 }
 0x143   : > { %1594 = vmatmul.mubr.bf16.gmra.mrb[60].mxu1 %v1212_v62 }
 0x144   : > { %1980 = vmatmul.mubr.bf16.gmra.mrb[60].mxu0 %v1216_v63 }
 0x19e   : > { %v1445_v0 = vpop.f32.mrb[0].mxu1 }
 0x19f   : > { %v1831_v1 = vpop.f32.mrb[0].mxu0  ;;  %v1447_v2 = vpop.f32.mrb[1].mxu1 }
 0x1a0   : > { %v2173_v3 = vadd.f32 %v1831_v1, %v1445_v0  ;;  %v1833_v4 = vpop.f32.mrb[1].mxu0  ;;  %v1449_v5 = vpop.f32.mrb[2].mxu1 }
 0x1a1   : > { %v2174_v6 = vadd.f32 %v1833_v4, %v1447_v2  ;;  %v1835_v7 = vpop.f32.mrb[2].mxu0  ;;  %v1451_v8 = vpop.f32.mrb[3].mxu1 }
 0x1a2   : > { %1990 = vst [vmem:[%s3594_s20] sm:$0xff] %v2173_v3  ;;  %v2175_v9 = vadd.f32 %v1835_v7, %v1449_v5  ;;  %v1837_v10 = vpop.f32.mrb[3].mxu0 }
 0x1a3   : > { %1992 = vst.msk [vmem:[%s3594_s20 + $0x8] sm:$0xff] %vm1991_vm0, %v2174_v6  ;;  %v2176_v11 = vadd.f32 %v1837_v10, %v1451_v8 }
 0x1a4   : > { %1993 = vst [vmem:[%s3594_s20 + $0x10] sm:$0xff] %v2175_v9 }
 0x1a5   : > { %1994 = vst.msk [vmem:[%s3594_s20 + $0x18] sm:$0xff] %vm1991_vm0, %v2176_v11 }
 0x1a6   : > { %v1455_v12 = vpop.f32.mrb[4].mxu1 }
 0x1a7   : > { %v1841_v13 = vpop.f32.mrb[4].mxu0  ;;  %v1457_v14 = vpop.f32.mrb[5].mxu1 }
 0x1a8   : > { %v2177_v15 = vadd.f32 %v1841_v13, %v1455_v12  ;;  %v1843_v16 = vpop.f32.mrb[5].mxu0  ;;  %v1459_v17 = vpop.f32.mrb[6].mxu1 }
 0x1a9   : > { %v2178_v18 = vadd.f32 %v1843_v16, %v1457_v14  ;;  %v1845_v19 = vpop.f32.mrb[6].mxu0  ;;  %v1461_v20 = vpop.f32.mrb[7].mxu1 }
 0x1aa   : > { %1995 = vst [vmem:[%s3594_s20 + $0x20] sm:$0xff] %v2177_v15  ;;  %v2179_v21 = vadd.f32 %v1845_v19, %v1459_v17  ;;  %v1847_v22 = vpop.f32.mrb[7].mxu0 }
 0x1ab   : > { %1996 = vst.msk [vmem:[%s3594_s20 + $0x28] sm:$0xff] %vm1991_vm0, %v2178_v18  ;;  %v2180_v23 = vadd.f32 %v1847_v22, %v1461_v20 }
 0x1ac   : > { %1997 = vst [vmem:[%s3594_s20 + $0x30] sm:$0xff] %v2179_v21 }
 0x1ad   : > { %1998 = vst.msk [vmem:[%s3594_s20 + $0x38] sm:$0xff] %vm1991_vm0, %v2180_v23 }
 0x1ae   : > { %v1465_v24 = vpop.f32.mrb[8].mxu1 }
 0x1af   : > { %v1851_v25 = vpop.f32.mrb[8].mxu0  ;;  %v1467_v26 = vpop.f32.mrb[9].mxu1 }
 0x1b0   : > { %v2181_v27 = vadd.f32 %v1851_v25, %v1465_v24  ;;  %v1853_v28 = vpop.f32.mrb[9].mxu0  ;;  %v1469_v29 = vpop.f32.mrb[10].mxu1 }
 0x1b1   : > { %v2182_v30 = vadd.f32 %v1853_v28, %v1467_v26  ;;  %v1855_v31 = vpop.f32.mrb[10].mxu0  ;;  %v1471_v32 = vpop.f32.mrb[11].mxu1 }
 0x1b2   : > { %1999 = vst [vmem:[%s3594_s20 + $0x40] sm:$0xff] %v2181_v27  ;;  %v2183_v33 = vadd.f32 %v1855_v31, %v1469_v29  ;;  %v1857_v34 = vpop.f32.mrb[11].mxu0 }
 0x1b3   : > { %2000 = vst.msk [vmem:[%s3594_s20 + $0x48] sm:$0xff] %vm1991_vm0, %v2182_v30  ;;  %v2184_v35 = vadd.f32 %v1857_v34, %v1471_v32 }
 0x1b4   : > { %2001 = vst [vmem:[%s3594_s20 + $0x50] sm:$0xff] %v2183_v33 }
 0x1b5   : > { %2002 = vst.msk [vmem:[%s3594_s20 + $0x58] sm:$0xff] %vm1991_vm0, %v2184_v35 }
 0x1b6   : > { %v1475_v36 = vpop.f32.mrb[12].mxu1 }
 0x1b7   : > { %v1861_v37 = vpop.f32.mrb[12].mxu0  ;;  %v1477_v38 = vpop.f32.mrb[13].mxu1 }
 0x1b8   : > { %v2185_v39 = vadd.f32 %v1861_v37, %v1475_v36  ;;  %v1863_v40 = vpop.f32.mrb[13].mxu0  ;;  %v1479_v41 = vpop.f32.mrb[14].mxu1 }
 0x1b9   : > { %v2186_v42 = vadd.f32 %v1863_v40, %v1477_v38  ;;  %v1865_v43 = vpop.f32.mrb[14].mxu0  ;;  %v1481_v44 = vpop.f32.mrb[15].mxu1 }
 0x1ba   : > { %2003 = vst [vmem:[%s3594_s20 + $0x60] sm:$0xff] %v2185_v39  ;;  %v2187_v45 = vadd.f32 %v1865_v43, %v1479_v41  ;;  %v1867_v46 = vpop.f32.mrb[15].mxu0 }
 0x1bb   : > { %2004 = vst.msk [vmem:[%s3594_s20 + $0x68] sm:$0xff] %vm1991_vm0, %v2186_v42  ;;  %v2188_v47 = vadd.f32 %v1867_v46, %v1481_v44 }
 0x1bc   : > { %2005 = vst [vmem:[%s3594_s20 + $0x70] sm:$0xff] %v2187_v45 }
 0x1bd   : > { %2006 = vst.msk [vmem:[%s3594_s20 + $0x78] sm:$0xff] %vm1991_vm0, %v2188_v47 }
 0x1be   : > { %v1485_v48 = vpop.f32.mrb[16].mxu1 }
 0x1bf   : > { %v1871_v49 = vpop.f32.mrb[16].mxu0  ;;  %v1487_v50 = vpop.f32.mrb[17].mxu1 }
 0x1c0   : > { %v2189_v51 = vadd.f32 %v1871_v49, %v1485_v48  ;;  %v1873_v52 = vpop.f32.mrb[17].mxu0  ;;  %v1489_v53 = vpop.f32.mrb[18].mxu1 }
 0x1c1   : > { %v2190_v54 = vadd.f32 %v1873_v52, %v1487_v50  ;;  %v1875_v55 = vpop.f32.mrb[18].mxu0  ;;  %v1491_v56 = vpop.f32.mrb[19].mxu1 }
 0x1c2   : > { %2007 = vst [vmem:[%s3594_s20 + $0x80] sm:$0xff] %v2189_v51  ;;  %v2191_v57 = vadd.f32 %v1875_v55, %v1489_v53  ;;  %v1877_v58 = vpop.f32.mrb[19].mxu0 }
 0x1c3   : > { %2008 = vst.msk [vmem:[%s3594_s20 + $0x88] sm:$0xff] %vm1991_vm0, %v2190_v54  ;;  %v2192_v59 = vadd.f32 %v1877_v58, %v1491_v56 }
 0x1c4   : > { %2009 = vst [vmem:[%s3594_s20 + $0x90] sm:$0xff] %v2191_v57 }
 0x1c5   : > { %2010 = vst.msk [vmem:[%s3594_s20 + $0x98] sm:$0xff] %vm1991_vm0, %v2192_v59 }
 0x1c6   : > { %v1495_v60 = vpop.f32.mrb[20].mxu1 }
 0x1c7   : > { %v1881_v61 = vpop.f32.mrb[20].mxu0  ;;  %v1497_v62 = vpop.f32.mrb[21].mxu1 }
 0x1c8   : > { %v2193_v63 = vadd.f32 %v1881_v61, %v1495_v60  ;;  %v1883_v0 = vpop.f32.mrb[21].mxu0  ;;  %v1499_v1 = vpop.f32.mrb[22].mxu1 }
 0x1c9   : > { %v2194_v2 = vadd.f32 %v1883_v0, %v1497_v62  ;;  %v1885_v3 = vpop.f32.mrb[22].mxu0  ;;  %v1501_v4 = vpop.f32.mrb[23].mxu1 }
 0x1ca   : > { %2011 = vst [vmem:[%s3594_s20 + $0xa0] sm:$0xff] %v2193_v63  ;;  %v2195_v5 = vadd.f32 %v1885_v3, %v1499_v1  ;;  %v1887_v6 = vpop.f32.mrb[23].mxu0 }
 0x1cb   : > { %2012 = vst.msk [vmem:[%s3594_s20 + $0xa8] sm:$0xff] %vm1991_vm0, %v2194_v2  ;;  %v2196_v7 = vadd.f32 %v1887_v6, %v1501_v4 }
 0x1cc   : > { %2013 = vst [vmem:[%s3594_s20 + $0xb0] sm:$0xff] %v2195_v5 }
 0x1cd   : > { %2014 = vst.msk [vmem:[%s3594_s20 + $0xb8] sm:$0xff] %vm1991_vm0, %v2196_v7 }
 0x1ce   : > { %v1505_v8 = vpop.f32.mrb[24].mxu1 }
 0x1cf   : > { %v1891_v9 = vpop.f32.mrb[24].mxu0  ;;  %v1507_v10 = vpop.f32.mrb[25].mxu1 }
 0x1d0   : > { %v2197_v11 = vadd.f32 %v1891_v9, %v1505_v8  ;;  %v1893_v12 = vpop.f32.mrb[25].mxu0  ;;  %v1509_v13 = vpop.f32.mrb[26].mxu1 }
 0x1d1   : > { %v2198_v14 = vadd.f32 %v1893_v12, %v1507_v10  ;;  %v1895_v15 = vpop.f32.mrb[26].mxu0  ;;  %v1511_v16 = vpop.f32.mrb[27].mxu1 }
 0x1d2   : > { %2015 = vst [vmem:[%s3594_s20 + $0xc0] sm:$0xff] %v2197_v11  ;;  %v2199_v17 = vadd.f32 %v1895_v15, %v1509_v13  ;;  %v1897_v18 = vpop.f32.mrb[27].mxu0 }
 0x1d3   : > { %2016 = vst.msk [vmem:[%s3594_s20 + $0xc8] sm:$0xff] %vm1991_vm0, %v2198_v14  ;;  %v2200_v19 = vadd.f32 %v1897_v18, %v1511_v16 }
 0x1d4   : > { %2017 = vst [vmem:[%s3594_s20 + $0xd0] sm:$0xff] %v2199_v17 }
 0x1d5   : > { %2018 = vst.msk [vmem:[%s3594_s20 + $0xd8] sm:$0xff] %vm1991_vm0, %v2200_v19 }
 0x1d6   : > { %v1515_v20 = vpop.f32.mrb[28].mxu1 }
 0x1d7   : > { %v1901_v21 = vpop.f32.mrb[28].mxu0  ;;  %v1517_v22 = vpop.f32.mrb[29].mxu1 }
 0x1d8   : > { %v2201_v23 = vadd.f32 %v1901_v21, %v1515_v20  ;;  %v1903_v24 = vpop.f32.mrb[29].mxu0  ;;  %v1519_v25 = vpop.f32.mrb[30].mxu1 }
 0x1d9   : > { %v2202_v26 = vadd.f32 %v1903_v24, %v1517_v22  ;;  %v1905_v27 = vpop.f32.mrb[30].mxu0  ;;  %v1521_v28 = vpop.f32.mrb[31].mxu1 }
 0x1da   : > { %2019 = vst [vmem:[%s3594_s20 + $0xe0] sm:$0xff] %v2201_v23  ;;  %v2203_v29 = vadd.f32 %v1905_v27, %v1519_v25  ;;  %v1907_v30 = vpop.f32.mrb[31].mxu0 }
 0x1db   : > { %2020 = vst.msk [vmem:[%s3594_s20 + $0xe8] sm:$0xff] %vm1991_vm0, %v2202_v26  ;;  %v2204_v31 = vadd.f32 %v1907_v30, %v1521_v28 }
 0x1dc   : > { %2021 = vst [vmem:[%s3594_s20 + $0xf0] sm:$0xff] %v2203_v29 }
 0x1dd   : > { %2022 = vst.msk [vmem:[%s3594_s20 + $0xf8] sm:$0xff] %vm1991_vm0, %v2204_v31 }
 0x1de   : > { %v1525_v32 = vpop.f32.mrb[32].mxu1 }
 0x1df   : > { %v1911_v33 = vpop.f32.mrb[32].mxu0  ;;  %v1527_v34 = vpop.f32.mrb[33].mxu1 }
 0x1e0   : > { %v2205_v35 = vadd.f32 %v1911_v33, %v1525_v32  ;;  %v1913_v36 = vpop.f32.mrb[33].mxu0  ;;  %v1529_v37 = vpop.f32.mrb[34].mxu1 }
 0x1e1   : > { %v2206_v38 = vadd.f32 %v1913_v36, %v1527_v34  ;;  %v1915_v39 = vpop.f32.mrb[34].mxu0  ;;  %v1531_v40 = vpop.f32.mrb[35].mxu1 }
 0x1e2   : > { %2023 = vst [vmem:[%s3594_s20 + $0x100] sm:$0xff] %v2205_v35  ;;  %v2207_v41 = vadd.f32 %v1915_v39, %v1529_v37  ;;  %v1917_v42 = vpop.f32.mrb[35].mxu0 }
 0x1e3   : > { %2024 = vst.msk [vmem:[%s3594_s20 + $0x108] sm:$0xff] %vm1991_vm0, %v2206_v38  ;;  %v2208_v43 = vadd.f32 %v1917_v42, %v1531_v40 }
 0x1e4   : > { %2025 = vst [vmem:[%s3594_s20 + $0x110] sm:$0xff] %v2207_v41 }
 0x1e5   : > { %2026 = vst.msk [vmem:[%s3594_s20 + $0x118] sm:$0xff] %vm1991_vm0, %v2208_v43 }
 0x1e6   : > { %v1535_v44 = vpop.f32.mrb[36].mxu1 }
 0x1e7   : > { %v1921_v45 = vpop.f32.mrb[36].mxu0  ;;  %v1537_v46 = vpop.f32.mrb[37].mxu1 }
 0x1e8   : > { %v2209_v47 = vadd.f32 %v1921_v45, %v1535_v44  ;;  %v1923_v48 = vpop.f32.mrb[37].mxu0  ;;  %v1539_v49 = vpop.f32.mrb[38].mxu1 }
 0x1e9   : > { %v2210_v50 = vadd.f32 %v1923_v48, %v1537_v46  ;;  %v1925_v51 = vpop.f32.mrb[38].mxu0  ;;  %v1541_v52 = vpop.f32.mrb[39].mxu1 }
 0x1ea   : > { %2027 = vst [vmem:[%s3594_s20 + $0x120] sm:$0xff] %v2209_v47  ;;  %v2211_v53 = vadd.f32 %v1925_v51, %v1539_v49  ;;  %v1927_v54 = vpop.f32.mrb[39].mxu0 }
 0x1eb   : > { %2028 = vst.msk [vmem:[%s3594_s20 + $0x128] sm:$0xff] %vm1991_vm0, %v2210_v50  ;;  %v2212_v55 = vadd.f32 %v1927_v54, %v1541_v52 }
 0x1ec   : > { %2029 = vst [vmem:[%s3594_s20 + $0x130] sm:$0xff] %v2211_v53 }
 0x1ed   : > { %2030 = vst.msk [vmem:[%s3594_s20 + $0x138] sm:$0xff] %vm1991_vm0, %v2212_v55 }
 0x1ee   : > { %v1545_v56 = vpop.f32.mrb[40].mxu1 }
 0x1ef   : > { %v1931_v57 = vpop.f32.mrb[40].mxu0  ;;  %v1547_v58 = vpop.f32.mrb[41].mxu1 }
 0x1f0   : > { %v2213_v59 = vadd.f32 %v1931_v57, %v1545_v56  ;;  %v1933_v60 = vpop.f32.mrb[41].mxu0  ;;  %v1549_v61 = vpop.f32.mrb[42].mxu1 }
 0x1f1   : > { %v2214_v62 = vadd.f32 %v1933_v60, %v1547_v58  ;;  %v1935_v63 = vpop.f32.mrb[42].mxu0  ;;  %v1551_v0 = vpop.f32.mrb[43].mxu1 }
 0x1f2   : > { %2031 = vst [vmem:[%s3594_s20 + $0x140] sm:$0xff] %v2213_v59  ;;  %v2215_v1 = vadd.f32 %v1935_v63, %v1549_v61  ;;  %v1937_v2 = vpop.f32.mrb[43].mxu0 }
 0x1f3   : > { %2032 = vst.msk [vmem:[%s3594_s20 + $0x148] sm:$0xff] %vm1991_vm0, %v2214_v62  ;;  %v2216_v3 = vadd.f32 %v1937_v2, %v1551_v0 }
 0x1f4   : > { %2033 = vst [vmem:[%s3594_s20 + $0x150] sm:$0xff] %v2215_v1 }
 0x1f5   : > { %2034 = vst.msk [vmem:[%s3594_s20 + $0x158] sm:$0xff] %vm1991_vm0, %v2216_v3 }
 0x1f6   : > { %v1555_v4 = vpop.f32.mrb[44].mxu1 }
 0x1f7   : > { %v1941_v5 = vpop.f32.mrb[44].mxu0  ;;  %v1557_v6 = vpop.f32.mrb[45].mxu1 }
 0x1f8   : > { %v2217_v7 = vadd.f32 %v1941_v5, %v1555_v4  ;;  %v1943_v8 = vpop.f32.mrb[45].mxu0  ;;  %v1559_v9 = vpop.f32.mrb[46].mxu1 }
 0x1f9   : > { %v2218_v10 = vadd.f32 %v1943_v8, %v1557_v6  ;;  %v1945_v11 = vpop.f32.mrb[46].mxu0  ;;  %v1561_v12 = vpop.f32.mrb[47].mxu1 }
 0x1fa   : > { %2035 = vst [vmem:[%s3594_s20 + $0x160] sm:$0xff] %v2217_v7  ;;  %v2219_v13 = vadd.f32 %v1945_v11, %v1559_v9  ;;  %v1947_v14 = vpop.f32.mrb[47].mxu0 }
 0x1fb   : > { %2036 = vst.msk [vmem:[%s3594_s20 + $0x168] sm:$0xff] %vm1991_vm0, %v2218_v10  ;;  %v2220_v15 = vadd.f32 %v1947_v14, %v1561_v12 }
 0x1fc   : > { %2037 = vst [vmem:[%s3594_s20 + $0x170] sm:$0xff] %v2219_v13 }
 0x1fd   : > { %2038 = vst.msk [vmem:[%s3594_s20 + $0x178] sm:$0xff] %vm1991_vm0, %v2220_v15 }
 0x1fe   : > { %v1565_v16 = vpop.f32.mrb[48].mxu1 }
 0x1ff   : > { %v1951_v17 = vpop.f32.mrb[48].mxu0  ;;  %v1567_v18 = vpop.f32.mrb[49].mxu1 }
 0x200   : > { %v2221_v19 = vadd.f32 %v1951_v17, %v1565_v16  ;;  %v1953_v20 = vpop.f32.mrb[49].mxu0  ;;  %v1569_v21 = vpop.f32.mrb[50].mxu1 }
 0x201   : > { %v2222_v22 = vadd.f32 %v1953_v20, %v1567_v18  ;;  %v1955_v23 = vpop.f32.mrb[50].mxu0  ;;  %v1571_v24 = vpop.f32.mrb[51].mxu1 }
 0x202   : > { %2039 = vst [vmem:[%s3594_s20 + $0x180] sm:$0xff] %v2221_v19  ;;  %v2223_v25 = vadd.f32 %v1955_v23, %v1569_v21  ;;  %v1957_v26 = vpop.f32.mrb[51].mxu0 }
 0x203   : > { %2040 = vst.msk [vmem:[%s3594_s20 + $0x188] sm:$0xff] %vm1991_vm0, %v2222_v22  ;;  %v2224_v27 = vadd.f32 %v1957_v26, %v1571_v24 }
 0x204   : > { %2041 = vst [vmem:[%s3594_s20 + $0x190] sm:$0xff] %v2223_v25 }
 0x205   : > { %2042 = vst.msk [vmem:[%s3594_s20 + $0x198] sm:$0xff] %vm1991_vm0, %v2224_v27 }
 0x206   : > { %v1575_v28 = vpop.f32.mrb[52].mxu1 }
 0x207   : > { %v1961_v29 = vpop.f32.mrb[52].mxu0  ;;  %v1577_v30 = vpop.f32.mrb[53].mxu1 }
 0x208   : > { %v2225_v31 = vadd.f32 %v1961_v29, %v1575_v28  ;;  %v1963_v32 = vpop.f32.mrb[53].mxu0  ;;  %v1579_v33 = vpop.f32.mrb[54].mxu1 }
 0x209   : > { %v2226_v34 = vadd.f32 %v1963_v32, %v1577_v30  ;;  %v1965_v35 = vpop.f32.mrb[54].mxu0  ;;  %v1581_v36 = vpop.f32.mrb[55].mxu1 }
 0x20a   : > { %2043 = vst [vmem:[%s3594_s20 + $0x1a0] sm:$0xff] %v2225_v31  ;;  %v2227_v37 = vadd.f32 %v1965_v35, %v1579_v33  ;;  %v1967_v38 = vpop.f32.mrb[55].mxu0 }
 0x20b   : > { %2044 = vst.msk [vmem:[%s3594_s20 + $0x1a8] sm:$0xff] %vm1991_vm0, %v2226_v34  ;;  %v2228_v39 = vadd.f32 %v1967_v38, %v1581_v36 }
 0x20c   : > { %2045 = vst [vmem:[%s3594_s20 + $0x1b0] sm:$0xff] %v2227_v37 }
 0x20d   : > { %2046 = vst.msk [vmem:[%s3594_s20 + $0x1b8] sm:$0xff] %vm1991_vm0, %v2228_v39 }
 0x20e   : > { %v1585_v40 = vpop.f32.mrb[56].mxu1 }
 0x20f   : > { %v1971_v41 = vpop.f32.mrb[56].mxu0  ;;  %v1587_v42 = vpop.f32.mrb[57].mxu1 }
 0x210   : > { %v2229_v43 = vadd.f32 %v1971_v41, %v1585_v40  ;;  %v1973_v44 = vpop.f32.mrb[57].mxu0  ;;  %v1589_v45 = vpop.f32.mrb[58].mxu1 }
 0x211   : > { %v2230_v46 = vadd.f32 %v1973_v44, %v1587_v42  ;;  %v1975_v47 = vpop.f32.mrb[58].mxu0  ;;  %v1591_v48 = vpop.f32.mrb[59].mxu1 }
 0x212   : > { %2047 = vst [vmem:[%s3594_s20 + $0x1c0] sm:$0xff] %v2229_v43  ;;  %v2231_v49 = vadd.f32 %v1975_v47, %v1589_v45  ;;  %v1977_v50 = vpop.f32.mrb[59].mxu0 }
 0x213   : > { %2048 = vst.msk [vmem:[%s3594_s20 + $0x1c8] sm:$0xff] %vm1991_vm0, %v2230_v46  ;;  %v2232_v51 = vadd.f32 %v1977_v50, %v1591_v48 }
 0x214   : > { %2049 = vst [vmem:[%s3594_s20 + $0x1d0] sm:$0xff] %v2231_v49 }
 0x215   : > { %2050 = vst.msk [vmem:[%s3594_s20 + $0x1d8] sm:$0xff] %vm1991_vm0, %v2232_v51 }
 0x216   : > { %v1595_v52 = vpop.f32.mrb[60].mxu1 }
 0x217   : > { %v1981_v53 = vpop.f32.mrb[60].mxu0  ;;  %v1597_v54 = vpop.f32.mrb[61].mxu1 }
 0x218   : > { %v2233_v55 = vadd.f32 %v1981_v53, %v1595_v52  ;;  %v1983_v56 = vpop.f32.mrb[61].mxu0  ;;  %v1599_v57 = vpop.f32.mrb[62].mxu1 }
 0x219   : > { %v2234_v58 = vadd.f32 %v1983_v56, %v1597_v54  ;;  %v1985_v59 = vpop.f32.mrb[62].mxu0  ;;  %v1601_v60 = vpop.f32.mrb[63].mxu1 }
 0x21a   : > { %2051 = vst [vmem:[%s3594_s20 + $0x1e0] sm:$0xff] %v2233_v55  ;;  %v2235_v61 = vadd.f32 %v1985_v59, %v1599_v57  ;;  %v1987_v62 = vpop.f32.mrb[63].mxu0 }
 0x21b   : > { %2052 = vst.msk [vmem:[%s3594_s20 + $0x1e8] sm:$0xff] %vm1991_vm0, %v2234_v58  ;;  %v2236_v63 = vadd.f32 %v1987_v62, %v1601_v60 }
 0x21c   : > { %2053 = vst [vmem:[%s3594_s20 + $0x1f0] sm:$0xff] %v2235_v61 }
 0x21d   : > { %2054 = vst.msk [vmem:[%s3594_s20 + $0x1f8] sm:$0xff] %vm1991_vm0, %v2236_v63 }
 0x21e PF: > { %s12_s11 = sadd.s32 1, %s2411_s11   ;;  %s3705_s9 = smov %s2407_s10 }
 0x21f   : > { %p9_p5 = scmp.ge.s32.totalorder %s12_s11, 6   ;;  %s3706_s10 = smov %s3708_s12 }
 0x221   :  { %11 = sbr.rel (!%p9_p5) target bundleno = 2 (0x2), region = 61 }

</bundles_post_ra>
